<compile_context>
chip_gen: v7x
topology: tpu7x:2x2x1
jax: 0.10.0
libtpu: 0.0.40
codegen_flags: <defaults>
</compile_context>

<pallas_src>
import math
import functools

import jax
import jax.numpy as jnp
from jax import lax
from jax.experimental import pallas as pl
from jax.experimental.pallas import tpu as pltpu


# ----------------------------- in-kernel helpers -----------------------------

def _layer_norm(h, gamma, beta, eps):
    # PyTorch nn.LayerNorm semantics: biased variance, eps inside the sqrt.
    mu = jnp.mean(h, axis=-1, keepdims=True)
    c = h - mu
    var = jnp.mean(c * c, axis=-1, keepdims=True)
    return c * lax.rsqrt(var + eps) * gamma + beta


def _bf16(x):
    return x.astype(jnp.bfloat16)


# ----------------------------- fused kernel ----------------------------------

def fused_transformer_kernel(xemb_ref, pe_ref, wqkv_ref, small_ref, wo_ref,
                             w1_ref, w2_ref, wout_ref, bout_ref,
                             o_ref, x_scr,
                             *, num_heads, ln_eps, emb_scale):
    # grid = (batch, layer).  One batch element per step; x_scr carries the
    # (S, E) activations across the sequential ("arbitrary") layer axis.
    layer = pl.program_id(1)
    S, E = x_scr.shape
    Hd = w1_ref.shape[2]
    D = E // num_heads
    scale = 1.0 / math.sqrt(D)

    # ---- layer 0: fused embedding scale + positional encoding ----
    @pl.when(layer == 0)
    def _():
        x_scr[...] = xemb_ref[0] * emb_scale + pe_ref[...]

    x = x_scr[...]                                               # (S, E) f32

    # Packed per-layer bias / LayerNorm parameters (single DMA, 8 rows).
    small = small_ref[0]                                         # (8, Wpack) f32
    bqkv = small[0:1, :3 * E]
    bo = small[1:2, :E]
    g1 = small[2:3, :E]
    be1 = small[3:4, :E]
    bf1 = small[4:5, :Hd]
    bf2 = small[5:6, :E]
    g2 = small[6:7, :E]
    be2 = small[7:8, :E]

    # ---- fused QKV projection: one bf16 MXU pass over x, f32 accumulation ----
    qkv = jnp.dot(_bf16(x), wqkv_ref[0],
                  preferred_element_type=jnp.float32) + bqkv     # (S, 3E) f32
    q = qkv[:, :E] * scale          # fold 1/sqrt(D) into q (S*E muls, not S*S)
    k = qkv[:, E:2 * E]
    v = qkv[:, 2 * E:]

    # ---- attention: per-head, output projection accumulated per head ----
    # (no lane-axis concat; Wo per head is a clean (D, E) ref sub-block)
    attn = jnp.zeros((S, E), jnp.float32) + bo
    for h in range(num_heads):
        qh = q[:, h * D:(h + 1) * D]
        kh = k[:, h * D:(h + 1) * D]
        vh = v[:, h * D:(h + 1) * D]
        s = lax.dot_general(_bf16(qh), _bf16(kh), (((1,), (1,)), ((), ())),
                            preferred_element_type=jnp.float32)  # (S, S)
        s = s - jnp.max(s, axis=-1, keepdims=True)
        p = jnp.exp(s)
        p = p * pl.reciprocal(jnp.sum(p, axis=-1, keepdims=True), approx=True)
        oh = jnp.dot(_bf16(p), _bf16(vh),
                     preferred_element_type=jnp.float32)         # (S, D)
        attn = attn + jnp.dot(_bf16(oh), wo_ref[0, h],
                              preferred_element_type=jnp.float32)

    # ---- residual + LayerNorm1 ----
    h1 = _layer_norm(x + attn, g1, be1, ln_eps)

    # ---- FeedForward: fc1 -> relu -> (dropout=identity) -> fc2 ----
    f = jnp.dot(_bf16(h1), w1_ref[0], preferred_element_type=jnp.float32) + bf1
    f = jnp.maximum(f, 0.0)
    f = jnp.dot(_bf16(f), w2_ref[0], preferred_element_type=jnp.float32) + bf2

    # ---- residual + LayerNorm2 -> carry to next layer ----
    x_new = _layer_norm(h1 + f, g2, be2, ln_eps)
    x_scr[...] = x_new

    # ---- last layer: fused vocab projection, lane-dense (S, Vpad) store ----
    @pl.when(layer == pl.num_programs(1) - 1)
    def _():
        o_ref[0] = (jnp.dot(_bf16(x_new), wout_ref[...],
                            preferred_element_type=jnp.float32) + bout_ref[...])


# ----------------------------- wrapper ---------------------------------------

def transformer_forward(params, src_ids, src_mask=None):
    """Full Transformer forward as one fused pallas_call.  Returns (B,S,V) logits."""
    # TODO(synk): src_mask is ignored (mask=None path); dropout is inference identity.
    del src_mask
    B, S = src_ids.shape
    E = params["embedding"].shape[1]
    nh = params["num_heads"]
    Hd = params["layers"][0]["w1"].shape[1]
    L = len(params["layers"])
    V = params["w_out"].shape[1]
    D = E // nh
    Vp = pl.cdiv(V, 128) * 128                        # lane-dense logits store
    Wpack = pl.cdiv(max(3 * E, Hd, E), 128) * 128     # packed small-params width

    bf16 = jnp.bfloat16

    # Embedding row gather in XLA (O(S*E) bytes) -- no one-hot table matmul,
    # and the (V, E) table never has to be resident in VMEM.
    x_emb = jnp.take(params["embedding"], src_ids, axis=0)       # (B, S, E) f32
    pe = params["pos_enc"][:S]

    # Per-layer weights stacked on a leading layer axis (selected by grid index).
    layers = params["layers"]
    wqkv_all = jnp.stack([lp["wqkv"] for lp in layers]).astype(bf16)        # (L, E, 3E)
    wo_all = jnp.stack([lp["wo"].reshape(nh, D, E) for lp in layers]).astype(bf16)
    w1_all = jnp.stack([lp["w1"] for lp in layers]).astype(bf16)            # (L, E, Hd)
    w2_all = jnp.stack([lp["w2"] for lp in layers]).astype(bf16)            # (L, Hd, E)

    def pack_small(lp):
        rows = [lp["bqkv"], lp["bo"], lp["ln1_g"], lp["ln1_b"],
                lp["bf1"], lp["bf2"], lp["ln2_g"], lp["ln2_b"]]
        out = jnp.zeros((8, Wpack), jnp.float32)
        for r, vec in enumerate(rows):
            out = out.at[r, :vec.shape[0]].set(vec)
        return out

    small_all = jnp.stack([pack_small(lp) for lp in layers])                # (L, 8, Wpack)

    w_out_pad = (jnp.zeros((E, Vp), jnp.float32)
                 .at[:, :V].set(params["w_out"]).astype(bf16))
    b_out_pad = jnp.zeros((1, Vp), jnp.float32).at[0, :V].set(params["b_out"])

    kern = functools.partial(fused_transformer_kernel, num_heads=nh,
                             ln_eps=1e-5, emb_scale=float(math.sqrt(E)))

    # Advisory cost estimate for the XLA scheduler.
    flops = (B * L * (2 * S * E * 3 * E
                      + nh * (4 * S * S * D + 2 * S * D * E)
                      + 4 * S * E * Hd)
             + B * 2 * S * E * Vp)
    transcend = B * L * (nh * (S * S + S) + 2 * S)
    bytes_accessed = (4 * B * S * E + 4 * S * E + 4 * B * S * Vp
                      + B * L * 2 * (E * 3 * E + E * E + E * Hd + Hd * E)
                      + B * L * 4 * 8 * Wpack + 2 * E * Vp + 4 * Vp)

    def lspec(shape):   # per-layer stacked block (index follows the layer axis)
        return pl.BlockSpec(shape, lambda b, l: (l,) + (0,) * (len(shape) - 1))

    def cspec(shape):   # constant block: DMA'd once, reused across grid steps
        return pl.BlockSpec(shape, lambda b, l: (0,) * len(shape))

    out = pl.pallas_call(
        kern,
        out_shape=jax.ShapeDtypeStruct((B, S, Vp), jnp.float32),
        grid=(B, L),
        in_specs=[
            pl.BlockSpec((1, S, E), lambda b, l: (b, 0, 0)),    # embedded tokens
            cspec((S, E)),                                      # positional encoding
            lspec((1, E, 3 * E)),                               # fused QKV weight
            lspec((1, 8, Wpack)),                               # packed biases / LN params
            lspec((1, nh, D, E)),                               # out-proj weight (per head)
            lspec((1, E, Hd)),                                  # fc1 weight
            lspec((1, Hd, E)),                                  # fc2 weight
            cspec((E, Vp)),                                     # vocab projection weight
            cspec((1, Vp)),                                     # vocab projection bias
        ],
        out_specs=pl.BlockSpec((1, S, Vp), lambda b, l: (b, 0, 0)),
        scratch_shapes=[pltpu.VMEM((S, E), jnp.float32)],       # x carried across layers
        compiler_params=pltpu.CompilerParams(
            dimension_semantics=("parallel", "arbitrary")),
        cost_estimate=pl.CostEstimate(flops=flops, transcendentals=transcend,
                                      bytes_accessed=bytes_accessed),
    )(x_emb, pe, wqkv_all, small_all, wo_all, w1_all, w2_all, w_out_pad, b_out_pad)

    return out[:, :, :V]


# ----------------------------- references (pure JAX) ---------------------------

def _layer_norm_ref(h, g, b, eps=1e-5):
    mu = jnp.mean(h, axis=-1, keepdims=True)
    var = jnp.mean((h - mu) ** 2, axis=-1, keepdims=True)
    return (h - mu) / jnp.sqrt(var + eps) * g + b


def _ref_forward(params, src_ids, *, cast_dot_inputs):
    """Pure-JAX reference.  cast_dot_inputs=True mirrors the kernel's precision
    policy (bf16 matmul inputs, f32 accumulation); False is full f32
    (PyTorch semantics)."""
    E = params["embedding"].shape[1]
    nh = params["num_heads"]
    B, S = src_ids.shape
    D = E // nh
    cast = (lambda a: a.astype(jnp.bfloat16)) if cast_dot_inputs else (lambda a: a)
    prec = None if cast_dot_inputs else jax.lax.Precision.HIGHEST

    def mm(a, b):
        return jnp.einsum("...k,kn->...n", cast(a), cast(b),
                          preferred_element_type=jnp.float32, precision=prec)

    x = params["embedding"][src_ids] * math.sqrt(E) + params["pos_enc"][None, :S]
    for lp in params["layers"]:
        qkv = mm(x, lp["wqkv"]) + lp["bqkv"]
        q = (qkv[..., :E] * (1.0 / math.sqrt(D))).reshape(B, S, nh, D)
        k = qkv[..., E:2 * E].reshape(B, S, nh, D)
        v = qkv[..., 2 * E:].reshape(B, S, nh, D)
        s = jnp.einsum("bqhd,bkhd->bhqk", cast(q), cast(k),
                       preferred_element_type=jnp.float32, precision=prec)
        p = jax.nn.softmax(s, axis=-1)
        o = jnp.einsum("bhqk,bkhd->bqhd", cast(p), cast(v),
                       preferred_element_type=jnp.float32,
                       precision=prec).reshape(B, S, E)
        attn = mm(o, lp["wo"]) + lp["bo"]
        h1 = _layer_norm_ref(x + attn, lp["ln1_g"], lp["ln1_b"])
        f = jnp.maximum(mm(h1, lp["w1"]) + lp["bf1"], 0.0)
        f = mm(f, lp["w2"]) + lp["bf2"]
        x = _layer_norm_ref(h1 + f, lp["ln2_g"], lp["ln2_b"])
    return mm(x, params["w_out"]) + params["b_out"]


# ----------------------------- init helpers ------------------------------------

def _init_linear(key, fan_in, fan_out):
    kw, kb = jax.random.split(key)
    bound = 1.0 / math.sqrt(fan_in)        # PyTorch nn.Linear default init range
    w = jax.random.uniform(kw, (fan_in, fan_out), minval=-bound, maxval=bound,
                           dtype=jnp.float32)
    b = jax.random.uniform(kb, (fan_out,), minval=-bound, maxval=bound,
                           dtype=jnp.float32)
    return w, b


def _init_layer(key, E, Hd):
    ks = jax.random.split(key, 6)
    wq, bq = _init_linear(ks[0], E, E)
    wk, bk = _init_linear(ks[1], E, E)
    wv, bv = _init_linear(ks[2], E, E)
    wo, bo = _init_linear(ks[3], E, E)
    w1, bf1 = _init_linear(ks[4], E, Hd)
    w2, bf2 = _init_linear(ks[5], Hd, E)
    return dict(
        wqkv=jnp.concatenate([wq, wk, wv], axis=1),
        bqkv=jnp.concatenate([bq, bk, bv]),
        wo=wo, bo=bo,
        ln1_g=jnp.ones((E,), jnp.float32), ln1_b=jnp.zeros((E,), jnp.float32),
        w1=w1, bf1=bf1, w2=w2, bf2=bf2,
        ln2_g=jnp.ones((E,), jnp.float32), ln2_b=jnp.zeros((E,), jnp.float32),
    )


def _positional_encoding(E, max_len):
    position = jnp.arange(max_len, dtype=jnp.float32)[:, None]
    div_term = jnp.exp(jnp.arange(0, E, 2, dtype=jnp.float32)
                       * (-math.log(10000.0) / E))
    pe = jnp.zeros((max_len, E), jnp.float32)
    pe = pe.at[:, 0::2].set(jnp.sin(position * div_term))
    pe = pe.at[:, 1::2].set(jnp.cos(position * div_term))
    return pe


# ----------------------------- main --------------------------------------------

if __name__ == "__main__":
    vocab_size = 64
    embedding_size = 32
    num_heads = 4
    hidden_size = 64
    num_layers = 2
    batch = 2
    seq = 8
    max_len = 64

    root = jax.random.PRNGKey(0)
    k_emb, k_out, k_src, k_layers = jax.random.split(root, 4)
    layer_keys = jax.random.split(k_layers, num_layers)

    w_out, b_out = _init_linear(k_out, embedding_size, vocab_size)
    params = dict(
        embedding=jax.random.normal(k_emb, (vocab_size, embedding_size),
                                    dtype=jnp.float32),
        pos_enc=_positional_encoding(embedding_size, max_len),
        layers=[_init_layer(k, embedding_size, hidden_size) for k in layer_keys],
        num_heads=num_heads,
        w_out=w_out, b_out=b_out,
    )

    src = jax.random.randint(k_src, (batch, seq), 0, vocab_size)

    out = transformer_forward(params, src, src_mask=None)
    out = jax.block_until_ready(out)
    assert out.shape == (batch, seq, vocab_size)

    # Structural check vs a precision-matched reference (bf16 dot inputs,
    # f32 accumulation) -- tight modulo the approx softmax reciprocal.
    ref_bf16 = _ref_forward(params, src, cast_dot_inputs=True)
    assert jnp.allclose(out, ref_bf16, atol=1e-2, rtol=1e-2), \
        "mismatch vs precision-matched reference"

    # Sanity check vs the full-f32 (PyTorch-semantics) reference; loose because
    # the kernel intentionally uses bf16 matmul inputs + approx reciprocal.
    ref_f32 = _ref_forward(params, src, cast_dot_inputs=False)
    assert jnp.allclose(out, ref_f32, atol=0.25, rtol=0.1), \
        "mismatch vs f32 reference beyond expected bf16 tolerance"

    print("KERNEL_OK")
</pallas_src>

<mosaic_0001>
module attributes {stable_mosaic.version = 11 : i64} {
  func.func @fused_transformer_kernel(%arg0: i32, %arg1: i32, %arg2: memref<1x8x32xf32, #tpu.memory_space<vmem>>, %arg3: memref<8x32xf32, #tpu.memory_space<vmem>>, %arg4: memref<1x32x96xbf16, #tpu.memory_space<vmem>>, %arg5: memref<1x8x128xf32, #tpu.memory_space<vmem>>, %arg6: memref<1x4x8x32xbf16, #tpu.memory_space<vmem>>, %arg7: memref<1x32x64xbf16, #tpu.memory_space<vmem>>, %arg8: memref<1x64x32xbf16, #tpu.memory_space<vmem>>, %arg9: memref<32x128xbf16, #tpu.memory_space<vmem>>, %arg10: memref<1x128xf32, #tpu.memory_space<vmem>>, %arg11: memref<1x8x128xf32, #tpu.memory_space<vmem>>, %arg12: memref<8x32xf32, #tpu.memory_space<vmem>>) attributes {dimension_semantics = [#tpu.dimension_semantics<parallel>, #tpu.dimension_semantics<arbitrary>], iteration_bounds = array<i64: 2, 2>, scalar_prefetch = 0 : i64, scratch_operands = 1 : i64, tpu.core_type = #tpu.core_type<tc>, window_params = [{transform_indices = @transform_0, window_bounds = array<i64: 1, 8, 32>}, {pipeline_mode = #tpu.pipeline_mode<synchronous>, transform_indices = @transform_1, window_bounds = array<i64: 8, 32>}, {transform_indices = @transform_2, window_bounds = array<i64: 1, 32, 96>}, {transform_indices = @transform_3, window_bounds = array<i64: 1, 8, 128>}, {transform_indices = @transform_4, window_bounds = array<i64: 1, 4, 8, 32>}, {transform_indices = @transform_5, window_bounds = array<i64: 1, 32, 64>}, {transform_indices = @transform_6, window_bounds = array<i64: 1, 64, 32>}, {pipeline_mode = #tpu.pipeline_mode<synchronous>, transform_indices = @transform_7, window_bounds = array<i64: 32, 128>}, {pipeline_mode = #tpu.pipeline_mode<synchronous>, transform_indices = @transform_8, window_bounds = array<i64: 1, 128>}, {transform_indices = @transform_9, window_bounds = array<i64: 1, 8, 128>}]} {
    %c0_i32 = arith.constant 0 : i32
    %0 = arith.cmpi eq, %arg1, %c0_i32 : i32
    %1 = arith.extui %0 : i1 to i32
    %c0_i32_0 = arith.constant 0 : i32
    %2 = arith.cmpi ne, %1, %c0_i32_0 : i32
    scf.if %2 {
      %c0_65 = arith.constant 0 : index
      %c0_66 = arith.constant 0 : index
      %c0_67 = arith.constant 0 : index
      %184 = vector.load %arg2[%c0_65, %c0_66, %c0_67] : memref<1x8x32xf32, #tpu.memory_space<vmem>>, vector<1x8x32xf32>
      %185 = vector.shape_cast %184 : vector<1x8x32xf32> to vector<8x32xf32>
      %cst_68 = arith.constant 5.65685415 : f32
      %186 = vector.broadcast %cst_68 : f32 to vector<8x32xf32>
      %187 = arith.mulf %185, %186 : vector<8x32xf32>
      %c0_69 = arith.constant 0 : index
      %c0_70 = arith.constant 0 : index
      %188 = vector.load %arg3[%c0_69, %c0_70] : memref<8x32xf32, #tpu.memory_space<vmem>>, vector<8x32xf32>
      %189 = arith.addf %187, %188 : vector<8x32xf32>
      %c0_71 = arith.constant 0 : index
      %c0_72 = arith.constant 0 : index
      %190 = vector.load %arg12[%c0_71, %c0_72] : memref<8x32xf32, #tpu.memory_space<vmem>>, vector<8x32xf32>
      tpu.vector_store %arg12[%c0_71, %c0_72], %189 {strides = array<i32>} : memref<8x32xf32, #tpu.memory_space<vmem>>, vector<8x32xf32>,
    } else {
    }
    %c0 = arith.constant 0 : index
    %c0_1 = arith.constant 0 : index
    %3 = vector.load %arg12[%c0, %c0_1] : memref<8x32xf32, #tpu.memory_space<vmem>>, vector<8x32xf32>
    %c0_2 = arith.constant 0 : index
    %c0_3 = arith.constant 0 : index
    %c0_4 = arith.constant 0 : index
    %4 = vector.load %arg5[%c0_2, %c0_3, %c0_4] : memref<1x8x128xf32, #tpu.memory_space<vmem>>, vector<1x8x128xf32>
    %5 = vector.shape_cast %4 : vector<1x8x128xf32> to vector<8x128xf32>
    %6 = vector.extract_strided_slice %5 {offsets = [0, 0], sizes = [1, 96], strides = [1, 1]} : vector<8x128xf32> to vector<1x96xf32>
    %7 = vector.extract_strided_slice %5 {offsets = [1, 0], sizes = [1, 32], strides = [1, 1]} : vector<8x128xf32> to vector<1x32xf32>
    %8 = vector.extract_strided_slice %5 {offsets = [2, 0], sizes = [1, 32], strides = [1, 1]} : vector<8x128xf32> to vector<1x32xf32>
    %9 = vector.extract_strided_slice %5 {offsets = [3, 0], sizes = [1, 32], strides = [1, 1]} : vector<8x128xf32> to vector<1x32xf32>
    %10 = vector.extract_strided_slice %5 {offsets = [4, 0], sizes = [1, 64], strides = [1, 1]} : vector<8x128xf32> to vector<1x64xf32>
    %11 = vector.extract_strided_slice %5 {offsets = [5, 0], sizes = [1, 32], strides = [1, 1]} : vector<8x128xf32> to vector<1x32xf32>
    %12 = vector.extract_strided_slice %5 {offsets = [6, 0], sizes = [1, 32], strides = [1, 1]} : vector<8x128xf32> to vector<1x32xf32>
    %13 = vector.extract_strided_slice %5 {offsets = [7, 0], sizes = [1, 32], strides = [1, 1]} : vector<8x128xf32> to vector<1x32xf32>
    %14 = arith.truncf %3 : vector<8x32xf32> to vector<8x32xbf16>
    %c0_5 = arith.constant 0 : index
    %c0_6 = arith.constant 0 : index
    %c0_7 = arith.constant 0 : index
    %15 = vector.load %arg4[%c0_5, %c0_6, %c0_7] : memref<1x32x96xbf16, #tpu.memory_space<vmem>>, vector<1x32x96xbf16>
    %16 = vector.shape_cast %15 : vector<1x32x96xbf16> to vector<32x96xbf16>
    %cst = arith.constant dense<0.000000e+00> : vector<8x96xf32>
    %17 = tpu.matmul %14, %16, %cst {dimension_numbers = #tpu.dot_dimension_numbers<[1], [0], [0], [1], [0, 0, 1, 1], [], []>} : vector<8x32xbf16>, vector<32x96xbf16>, vector<8x96xf32> -> vector<8x96xf32>
    %18 = vector.broadcast %6 : vector<1x96xf32> to vector<8x96xf32>
    %19 = arith.addf %17, %18 : vector<8x96xf32>
    %20 = vector.extract_strided_slice %19 {offsets = [0, 0], sizes = [8, 32], strides = [1, 1]} : vector<8x96xf32> to vector<8x32xf32>
    %cst_8 = arith.constant 0.353553385 : f32
    %21 = vector.broadcast %cst_8 : f32 to vector<8x32xf32>
    %22 = arith.mulf %20, %21 : vector<8x32xf32>
    %23 = vector.extract_strided_slice %19 {offsets = [0, 32], sizes = [8, 32], strides = [1, 1]} : vector<8x96xf32> to vector<8x32xf32>
    %24 = vector.extract_strided_slice %19 {offsets = [0, 64], sizes = [8, 32], strides = [1, 1]} : vector<8x96xf32> to vector<8x32xf32>
    %cst_9 = arith.constant 0.000000e+00 : f32
    %25 = vector.broadcast %cst_9 : f32 to vector<8x32xf32>
    %26 = vector.broadcast %7 : vector<1x32xf32> to vector<8x32xf32>
    %27 = arith.addf %25, %26 : vector<8x32xf32>
    %28 = vector.extract_strided_slice %22 {offsets = [0, 0], sizes = [8, 8], strides = [1, 1]} : vector<8x32xf32> to vector<8x8xf32>
    %29 = vector.extract_strided_slice %23 {offsets = [0, 0], sizes = [8, 8], strides = [1, 1]} : vector<8x32xf32> to vector<8x8xf32>
    %30 = vector.extract_strided_slice %24 {offsets = [0, 0], sizes = [8, 8], strides = [1, 1]} : vector<8x32xf32> to vector<8x8xf32>
    %31 = arith.truncf %28 : vector<8x8xf32> to vector<8x8xbf16>
    %32 = arith.truncf %29 : vector<8x8xf32> to vector<8x8xbf16>
    %cst_10 = arith.constant dense<0.000000e+00> : vector<8x8xf32>
    %33 = tpu.matmul %31, %32, %cst_10 {dimension_numbers = #tpu.dot_dimension_numbers<[1], [1], [0], [0], [0, 0, 1, 0], [], []>} : vector<8x8xbf16>, vector<8x8xbf16>, vector<8x8xf32> -> vector<8x8xf32>
    %cst_11 = arith.constant dense<0xFF800000> : vector<8xf32>
    %34 = vector.multi_reduction <maximumf>, %33, %cst_11 [1] : vector<8x8xf32> to vector<8xf32>
    %35 = vector.shape_cast %34 : vector<8xf32> to vector<8x1xf32>
    %36 = vector.broadcast %35 : vector<8x1xf32> to vector<8x8xf32>
    %37 = arith.subf %33, %36 : vector<8x8xf32>
    %38 = math.exp %37 : vector<8x8xf32>
    %cst_12 = arith.constant dense<0.000000e+00> : vector<8xf32>
    %39 = vector.multi_reduction <add>, %38, %cst_12 [1] : vector<8x8xf32> to vector<8xf32>
    %40 = vector.shape_cast %39 : vector<8xf32> to vector<8x1xf32>
    %41 = tpu.reciprocal %40 {approx = true} : vector<8x1xf32> -> vector<8x1xf32>
    %42 = vector.broadcast %41 : vector<8x1xf32> to vector<8x8xf32>
    %43 = arith.mulf %38, %42 : vector<8x8xf32>
    %44 = arith.truncf %43 : vector<8x8xf32> to vector<8x8xbf16>
    %45 = arith.truncf %30 : vector<8x8xf32> to vector<8x8xbf16>
    %cst_13 = arith.constant dense<0.000000e+00> : vector<8x8xf32>
    %46 = tpu.matmul %44, %45, %cst_13 {dimension_numbers = #tpu.dot_dimension_numbers<[1], [0], [0], [1], [0, 0, 1, 1], [], []>} : vector<8x8xbf16>, vector<8x8xbf16>, vector<8x8xf32> -> vector<8x8xf32>
    %47 = arith.truncf %46 : vector<8x8xf32> to vector<8x8xbf16>
    %c0_14 = arith.constant 0 : index
    %c0_15 = arith.constant 0 : index
    %c0_16 = arith.constant 0 : index
    %c0_17 = arith.constant 0 : index
    %48 = vector.load %arg6[%c0_14, %c0_15, %c0_16, %c0_17] : memref<1x4x8x32xbf16, #tpu.memory_space<vmem>>, vector<1x1x8x32xbf16>
    %49 = vector.shape_cast %48 : vector<1x1x8x32xbf16> to vector<8x32xbf16>
    %cst_18 = arith.constant dense<0.000000e+00> : vector<8x32xf32>
    %50 = tpu.matmul %47, %49, %cst_18 {dimension_numbers = #tpu.dot_dimension_numbers<[1], [0], [0], [1], [0, 0, 1, 1], [], []>} : vector<8x8xbf16>, vector<8x32xbf16>, vector<8x32xf32> -> vector<8x32xf32>
    %51 = arith.addf %27, %50 : vector<8x32xf32>
    %52 = vector.extract_strided_slice %22 {offsets = [0, 8], sizes = [8, 8], strides = [1, 1]} : vector<8x32xf32> to vector<8x8xf32>
    %53 = vector.extract_strided_slice %23 {offsets = [0, 8], sizes = [8, 8], strides = [1, 1]} : vector<8x32xf32> to vector<8x8xf32>
    %54 = vector.extract_strided_slice %24 {offsets = [0, 8], sizes = [8, 8], strides = [1, 1]} : vector<8x32xf32> to vector<8x8xf32>
    %55 = arith.truncf %52 : vector<8x8xf32> to vector<8x8xbf16>
    %56 = arith.truncf %53 : vector<8x8xf32> to vector<8x8xbf16>
    %cst_19 = arith.constant dense<0.000000e+00> : vector<8x8xf32>
    %57 = tpu.matmul %55, %56, %cst_19 {dimension_numbers = #tpu.dot_dimension_numbers<[1], [1], [0], [0], [0, 0, 1, 0], [], []>} : vector<8x8xbf16>, vector<8x8xbf16>, vector<8x8xf32> -> vector<8x8xf32>
    %cst_20 = arith.constant dense<0xFF800000> : vector<8xf32>
    %58 = vector.multi_reduction <maximumf>, %57, %cst_20 [1] : vector<8x8xf32> to vector<8xf32>
    %59 = vector.shape_cast %58 : vector<8xf32> to vector<8x1xf32>
    %60 = vector.broadcast %59 : vector<8x1xf32> to vector<8x8xf32>
    %61 = arith.subf %57, %60 : vector<8x8xf32>
    %62 = math.exp %61 : vector<8x8xf32>
    %cst_21 = arith.constant dense<0.000000e+00> : vector<8xf32>
    %63 = vector.multi_reduction <add>, %62, %cst_21 [1] : vector<8x8xf32> to vector<8xf32>
    %64 = vector.shape_cast %63 : vector<8xf32> to vector<8x1xf32>
    %65 = tpu.reciprocal %64 {approx = true} : vector<8x1xf32> -> vector<8x1xf32>
    %66 = vector.broadcast %65 : vector<8x1xf32> to vector<8x8xf32>
    %67 = arith.mulf %62, %66 : vector<8x8xf32>
    %68 = arith.truncf %67 : vector<8x8xf32> to vector<8x8xbf16>
    %69 = arith.truncf %54 : vector<8x8xf32> to vector<8x8xbf16>
    %cst_22 = arith.constant dense<0.000000e+00> : vector<8x8xf32>
    %70 = tpu.matmul %68, %69, %cst_22 {dimension_numbers = #tpu.dot_dimension_numbers<[1], [0], [0], [1], [0, 0, 1, 1], [], []>} : vector<8x8xbf16>, vector<8x8xbf16>, vector<8x8xf32> -> vector<8x8xf32>
    %71 = arith.truncf %70 : vector<8x8xf32> to vector<8x8xbf16>
    %c0_23 = arith.constant 0 : index
    %c1 = arith.constant 1 : index
    %c0_24 = arith.constant 0 : index
    %c0_25 = arith.constant 0 : index
    %72 = vector.load %arg6[%c0_23, %c1, %c0_24, %c0_25] : memref<1x4x8x32xbf16, #tpu.memory_space<vmem>>, vector<1x1x8x32xbf16>
    %73 = vector.shape_cast %72 : vector<1x1x8x32xbf16> to vector<8x32xbf16>
    %cst_26 = arith.constant dense<0.000000e+00> : vector<8x32xf32>
    %74 = tpu.matmul %71, %73, %cst_26 {dimension_numbers = #tpu.dot_dimension_numbers<[1], [0], [0], [1], [0, 0, 1, 1], [], []>} : vector<8x8xbf16>, vector<8x32xbf16>, vector<8x32xf32> -> vector<8x32xf32>
    %75 = arith.addf %51, %74 : vector<8x32xf32>
    %76 = vector.extract_strided_slice %22 {offsets = [0, 16], sizes = [8, 8], strides = [1, 1]} : vector<8x32xf32> to vector<8x8xf32>
    %77 = vector.extract_strided_slice %23 {offsets = [0, 16], sizes = [8, 8], strides = [1, 1]} : vector<8x32xf32> to vector<8x8xf32>
    %78 = vector.extract_strided_slice %24 {offsets = [0, 16], sizes = [8, 8], strides = [1, 1]} : vector<8x32xf32> to vector<8x8xf32>
    %79 = arith.truncf %76 : vector<8x8xf32> to vector<8x8xbf16>
    %80 = arith.truncf %77 : vector<8x8xf32> to vector<8x8xbf16>
    %cst_27 = arith.constant dense<0.000000e+00> : vector<8x8xf32>
    %81 = tpu.matmul %79, %80, %cst_27 {dimension_numbers = #tpu.dot_dimension_numbers<[1], [1], [0], [0], [0, 0, 1, 0], [], []>} : vector<8x8xbf16>, vector<8x8xbf16>, vector<8x8xf32> -> vector<8x8xf32>
    %cst_28 = arith.constant dense<0xFF800000> : vector<8xf32>
    %82 = vector.multi_reduction <maximumf>, %81, %cst_28 [1] : vector<8x8xf32> to vector<8xf32>
    %83 = vector.shape_cast %82 : vector<8xf32> to vector<8x1xf32>
    %84 = vector.broadcast %83 : vector<8x1xf32> to vector<8x8xf32>
    %85 = arith.subf %81, %84 : vector<8x8xf32>
    %86 = math.exp %85 : vector<8x8xf32>
    %cst_29 = arith.constant dense<0.000000e+00> : vector<8xf32>
    %87 = vector.multi_reduction <add>, %86, %cst_29 [1] : vector<8x8xf32> to vector<8xf32>
    %88 = vector.shape_cast %87 : vector<8xf32> to vector<8x1xf32>
    %89 = tpu.reciprocal %88 {approx = true} : vector<8x1xf32> -> vector<8x1xf32>
    %90 = vector.broadcast %89 : vector<8x1xf32> to vector<8x8xf32>
    %91 = arith.mulf %86, %90 : vector<8x8xf32>
    %92 = arith.truncf %91 : vector<8x8xf32> to vector<8x8xbf16>
    %93 = arith.truncf %78 : vector<8x8xf32> to vector<8x8xbf16>
    %cst_30 = arith.constant dense<0.000000e+00> : vector<8x8xf32>
    %94 = tpu.matmul %92, %93, %cst_30 {dimension_numbers = #tpu.dot_dimension_numbers<[1], [0], [0], [1], [0, 0, 1, 1], [], []>} : vector<8x8xbf16>, vector<8x8xbf16>, vector<8x8xf32> -> vector<8x8xf32>
    %95 = arith.truncf %94 : vector<8x8xf32> to vector<8x8xbf16>
    %c0_31 = arith.constant 0 : index
    %c2 = arith.constant 2 : index
    %c0_32 = arith.constant 0 : index
    %c0_33 = arith.constant 0 : index
    %96 = vector.load %arg6[%c0_31, %c2, %c0_32, %c0_33] : memref<1x4x8x32xbf16, #tpu.memory_space<vmem>>, vector<1x1x8x32xbf16>
    %97 = vector.shape_cast %96 : vector<1x1x8x32xbf16> to vector<8x32xbf16>
    %cst_34 = arith.constant dense<0.000000e+00> : vector<8x32xf32>
    %98 = tpu.matmul %95, %97, %cst_34 {dimension_numbers = #tpu.dot_dimension_numbers<[1], [0], [0], [1], [0, 0, 1, 1], [], []>} : vector<8x8xbf16>, vector<8x32xbf16>, vector<8x32xf32> -> vector<8x32xf32>
    %99 = arith.addf %75, %98 : vector<8x32xf32>
    %100 = vector.extract_strided_slice %22 {offsets = [0, 24], sizes = [8, 8], strides = [1, 1]} : vector<8x32xf32> to vector<8x8xf32>
    %101 = vector.extract_strided_slice %23 {offsets = [0, 24], sizes = [8, 8], strides = [1, 1]} : vector<8x32xf32> to vector<8x8xf32>
    %102 = vector.extract_strided_slice %24 {offsets = [0, 24], sizes = [8, 8], strides = [1, 1]} : vector<8x32xf32> to vector<8x8xf32>
    %103 = arith.truncf %100 : vector<8x8xf32> to vector<8x8xbf16>
    %104 = arith.truncf %101 : vector<8x8xf32> to vector<8x8xbf16>
    %cst_35 = arith.constant dense<0.000000e+00> : vector<8x8xf32>
    %105 = tpu.matmul %103, %104, %cst_35 {dimension_numbers = #tpu.dot_dimension_numbers<[1], [1], [0], [0], [0, 0, 1, 0], [], []>} : vector<8x8xbf16>, vector<8x8xbf16>, vector<8x8xf32> -> vector<8x8xf32>
    %cst_36 = arith.constant dense<0xFF800000> : vector<8xf32>
    %106 = vector.multi_reduction <maximumf>, %105, %cst_36 [1] : vector<8x8xf32> to vector<8xf32>
    %107 = vector.shape_cast %106 : vector<8xf32> to vector<8x1xf32>
    %108 = vector.broadcast %107 : vector<8x1xf32> to vector<8x8xf32>
    %109 = arith.subf %105, %108 : vector<8x8xf32>
    %110 = math.exp %109 : vector<8x8xf32>
    %cst_37 = arith.constant dense<0.000000e+00> : vector<8xf32>
    %111 = vector.multi_reduction <add>, %110, %cst_37 [1] : vector<8x8xf32> to vector<8xf32>
    %112 = vector.shape_cast %111 : vector<8xf32> to vector<8x1xf32>
    %113 = tpu.reciprocal %112 {approx = true} : vector<8x1xf32> -> vector<8x1xf32>
    %114 = vector.broadcast %113 : vector<8x1xf32> to vector<8x8xf32>
    %115 = arith.mulf %110, %114 : vector<8x8xf32>
    %116 = arith.truncf %115 : vector<8x8xf32> to vector<8x8xbf16>
    %117 = arith.truncf %102 : vector<8x8xf32> to vector<8x8xbf16>
    %cst_38 = arith.constant dense<0.000000e+00> : vector<8x8xf32>
    %118 = tpu.matmul %116, %117, %cst_38 {dimension_numbers = #tpu.dot_dimension_numbers<[1], [0], [0], [1], [0, 0, 1, 1], [], []>} : vector<8x8xbf16>, vector<8x8xbf16>, vector<8x8xf32> -> vector<8x8xf32>
    %119 = arith.truncf %118 : vector<8x8xf32> to vector<8x8xbf16>
    %c0_39 = arith.constant 0 : index
    %c3 = arith.constant 3 : index
    %c0_40 = arith.constant 0 : index
    %c0_41 = arith.constant 0 : index
    %120 = vector.load %arg6[%c0_39, %c3, %c0_40, %c0_41] : memref<1x4x8x32xbf16, #tpu.memory_space<vmem>>, vector<1x1x8x32xbf16>
    %121 = vector.shape_cast %120 : vector<1x1x8x32xbf16> to vector<8x32xbf16>
    %cst_42 = arith.constant dense<0.000000e+00> : vector<8x32xf32>
    %122 = tpu.matmul %119, %121, %cst_42 {dimension_numbers = #tpu.dot_dimension_numbers<[1], [0], [0], [1], [0, 0, 1, 1], [], []>} : vector<8x8xbf16>, vector<8x32xbf16>, vector<8x32xf32> -> vector<8x32xf32>
    %123 = arith.addf %99, %122 : vector<8x32xf32>
    %124 = arith.addf %3, %123 : vector<8x32xf32>
    %cst_43 = arith.constant dense<0.000000e+00> : vector<8xf32>
    %125 = vector.multi_reduction <add>, %124, %cst_43 [1] : vector<8x32xf32> to vector<8xf32>
    %126 = vector.shape_cast %125 : vector<8xf32> to vector<8x1xf32>
    %cst_44 = arith.constant 3.200000e+01 : f32
    %127 = vector.broadcast %cst_44 : f32 to vector<8x1xf32>
    %128 = arith.divf %126, %127 : vector<8x1xf32>
    %129 = vector.broadcast %128 : vector<8x1xf32> to vector<8x32xf32>
    %130 = arith.subf %124, %129 : vector<8x32xf32>
    %131 = arith.mulf %130, %130 : vector<8x32xf32>
    %cst_45 = arith.constant dense<0.000000e+00> : vector<8xf32>
    %132 = vector.multi_reduction <add>, %131, %cst_45 [1] : vector<8x32xf32> to vector<8xf32>
    %133 = vector.shape_cast %132 : vector<8xf32> to vector<8x1xf32>
    %cst_46 = arith.constant 3.200000e+01 : f32
    %134 = vector.broadcast %cst_46 : f32 to vector<8x1xf32>
    %135 = arith.divf %133, %134 : vector<8x1xf32>
    %cst_47 = arith.constant 9.99999974E-6 : f32
    %136 = vector.broadcast %cst_47 : f32 to vector<8x1xf32>
    %137 = arith.addf %135, %136 : vector<8x1xf32>
    %138 = math.rsqrt %137 : vector<8x1xf32>
    %139 = vector.broadcast %138 : vector<8x1xf32> to vector<8x32xf32>
    %140 = arith.mulf %130, %139 : vector<8x32xf32>
    %141 = vector.broadcast %8 : vector<1x32xf32> to vector<8x32xf32>
    %142 = arith.mulf %140, %141 : vector<8x32xf32>
    %143 = vector.broadcast %9 : vector<1x32xf32> to vector<8x32xf32>
    %144 = arith.addf %142, %143 : vector<8x32xf32>
    %145 = arith.truncf %144 : vector<8x32xf32> to vector<8x32xbf16>
    %c0_48 = arith.constant 0 : index
    %c0_49 = arith.constant 0 : index
    %c0_50 = arith.constant 0 : index
    %146 = vector.load %arg7[%c0_48, %c0_49, %c0_50] : memref<1x32x64xbf16, #tpu.memory_space<vmem>>, vector<1x32x64xbf16>
    %147 = vector.shape_cast %146 : vector<1x32x64xbf16> to vector<32x64xbf16>
    %cst_51 = arith.constant dense<0.000000e+00> : vector<8x64xf32>
    %148 = tpu.matmul %145, %147, %cst_51 {dimension_numbers = #tpu.dot_dimension_numbers<[1], [0], [0], [1], [0, 0, 1, 1], [], []>} : vector<8x32xbf16>, vector<32x64xbf16>, vector<8x64xf32> -> vector<8x64xf32>
    %149 = vector.broadcast %10 : vector<1x64xf32> to vector<8x64xf32>
    %150 = arith.addf %148, %149 : vector<8x64xf32>
    %cst_52 = arith.constant 0.000000e+00 : f32
    %151 = vector.broadcast %cst_52 : f32 to vector<8x64xf32>
    %152 = arith.maximumf %150, %151 : vector<8x64xf32>
    %153 = arith.truncf %152 : vector<8x64xf32> to vector<8x64xbf16>
    %c0_53 = arith.constant 0 : index
    %c0_54 = arith.constant 0 : index
    %c0_55 = arith.constant 0 : index
    %154 = vector.load %arg8[%c0_53, %c0_54, %c0_55] : memref<1x64x32xbf16, #tpu.memory_space<vmem>>, vector<1x64x32xbf16>
    %155 = vector.shape_cast %154 : vector<1x64x32xbf16> to vector<64x32xbf16>
    %cst_56 = arith.constant dense<0.000000e+00> : vector<8x32xf32>
    %156 = tpu.matmul %153, %155, %cst_56 {dimension_numbers = #tpu.dot_dimension_numbers<[1], [0], [0], [1], [0, 0, 1, 1], [], []>} : vector<8x64xbf16>, vector<64x32xbf16>, vector<8x32xf32> -> vector<8x32xf32>
    %157 = vector.broadcast %11 : vector<1x32xf32> to vector<8x32xf32>
    %158 = arith.addf %156, %157 : vector<8x32xf32>
    %159 = arith.addf %144, %158 : vector<8x32xf32>
    %cst_57 = arith.constant dense<0.000000e+00> : vector<8xf32>
    %160 = vector.multi_reduction <add>, %159, %cst_57 [1] : vector<8x32xf32> to vector<8xf32>
    %161 = vector.shape_cast %160 : vector<8xf32> to vector<8x1xf32>
    %cst_58 = arith.constant 3.200000e+01 : f32
    %162 = vector.broadcast %cst_58 : f32 to vector<8x1xf32>
    %163 = arith.divf %161, %162 : vector<8x1xf32>
    %164 = vector.broadcast %163 : vector<8x1xf32> to vector<8x32xf32>
    %165 = arith.subf %159, %164 : vector<8x32xf32>
    %166 = arith.mulf %165, %165 : vector<8x32xf32>
    %cst_59 = arith.constant dense<0.000000e+00> : vector<8xf32>
    %167 = vector.multi_reduction <add>, %166, %cst_59 [1] : vector<8x32xf32> to vector<8xf32>
    %168 = vector.shape_cast %167 : vector<8xf32> to vector<8x1xf32>
    %cst_60 = arith.constant 3.200000e+01 : f32
    %169 = vector.broadcast %cst_60 : f32 to vector<8x1xf32>
    %170 = arith.divf %168, %169 : vector<8x1xf32>
    %cst_61 = arith.constant 9.99999974E-6 : f32
    %171 = vector.broadcast %cst_61 : f32 to vector<8x1xf32>
    %172 = arith.addf %170, %171 : vector<8x1xf32>
    %173 = math.rsqrt %172 : vector<8x1xf32>
    %174 = vector.broadcast %173 : vector<8x1xf32> to vector<8x32xf32>
    %175 = arith.mulf %165, %174 : vector<8x32xf32>
    %176 = vector.broadcast %12 : vector<1x32xf32> to vector<8x32xf32>
    %177 = arith.mulf %175, %176 : vector<8x32xf32>
    %178 = vector.broadcast %13 : vector<1x32xf32> to vector<8x32xf32>
    %179 = arith.addf %177, %178 : vector<8x32xf32>
    %c0_62 = arith.constant 0 : index
    %c0_63 = arith.constant 0 : index
    %180 = vector.load %arg12[%c0_62, %c0_63] : memref<8x32xf32, #tpu.memory_space<vmem>>, vector<8x32xf32>
    tpu.vector_store %arg12[%c0_62, %c0_63], %179 {strides = array<i32>} : memref<8x32xf32, #tpu.memory_space<vmem>>, vector<8x32xf32>,
    %c1_i32 = arith.constant 1 : i32
    %181 = arith.cmpi eq, %arg1, %c1_i32 : i32
    %182 = arith.extui %181 : i1 to i32
    %c0_i32_64 = arith.constant 0 : i32
    %183 = arith.cmpi ne, %182, %c0_i32_64 : i32
    scf.if %183 {
      %184 = arith.truncf %179 : vector<8x32xf32> to vector<8x32xbf16>
      %c0_65 = arith.constant 0 : index
      %c0_66 = arith.constant 0 : index
      %185 = vector.load %arg9[%c0_65, %c0_66] : memref<32x128xbf16, #tpu.memory_space<vmem>>, vector<32x128xbf16>
      %cst_67 = arith.constant dense<0.000000e+00> : vector<8x128xf32>
      %186 = tpu.matmul %184, %185, %cst_67 {dimension_numbers = #tpu.dot_dimension_numbers<[1], [0], [0], [1], [0, 0, 1, 1], [], []>} : vector<8x32xbf16>, vector<32x128xbf16>, vector<8x128xf32> -> vector<8x128xf32>
      %c0_68 = arith.constant 0 : index
      %c0_69 = arith.constant 0 : index
      %187 = vector.load %arg10[%c0_68, %c0_69] : memref<1x128xf32, #tpu.memory_space<vmem>>, vector<1x128xf32>
      %188 = vector.broadcast %187 : vector<1x128xf32> to vector<8x128xf32>
      %189 = arith.addf %186, %188 : vector<8x128xf32>
      %c0_70 = arith.constant 0 : index
      %c0_71 = arith.constant 0 : index
      %c0_72 = arith.constant 0 : index
      %190 = vector.load %arg11[%c0_70, %c0_71, %c0_72] : memref<1x8x128xf32, #tpu.memory_space<vmem>>, vector<1x8x128xf32>
      %191 = vector.shape_cast %190 : vector<1x8x128xf32> to vector<8x128xf32>
      %192 = vector.shape_cast %189 : vector<8x128xf32> to vector<1x8x128xf32>
      tpu.vector_store %arg11[%c0_70, %c0_71, %c0_72], %192 {strides = array<i32>} : memref<1x8x128xf32, #tpu.memory_space<vmem>>, vector<1x8x128xf32>,
    } else {
    }
    return
  }
  func.func @transform_0(%arg0: i32, %arg1: i32) -> (i32, i32, i32) {
    %c0_i32 = arith.constant 0 : i32
    %c0_i32_0 = arith.constant 0 : i32
    %c0_i32_1 = arith.constant 0 : i32
    return %arg0, %c0_i32, %c0_i32_0 : i32, i32, i32
  }
  func.func @transform_1(%arg0: i32, %arg1: i32) -> (i32, i32) {
    %c0_i32 = arith.constant 0 : i32
    %c0_i32_0 = arith.constant 0 : i32
    %c0_i32_1 = arith.constant 0 : i32
    return %c0_i32, %c0_i32_0 : i32, i32
  }
  func.func @transform_2(%arg0: i32, %arg1: i32) -> (i32, i32, i32) {
    %c0_i32 = arith.constant 0 : i32
    %c0_i32_0 = arith.constant 0 : i32
    %c0_i32_1 = arith.constant 0 : i32
    return %arg1, %c0_i32, %c0_i32_0 : i32, i32, i32
  }
  func.func @transform_3(%arg0: i32, %arg1: i32) -> (i32, i32, i32) {
    %c0_i32 = arith.constant 0 : i32
    %c0_i32_0 = arith.constant 0 : i32
    %c0_i32_1 = arith.constant 0 : i32
    return %arg1, %c0_i32, %c0_i32_0 : i32, i32, i32
  }
  func.func @transform_4(%arg0: i32, %arg1: i32) -> (i32, i32, i32, i32) {
    %c0_i32 = arith.constant 0 : i32
    %c0_i32_0 = arith.constant 0 : i32
    %c0_i32_1 = arith.constant 0 : i32
    %c0_i32_2 = arith.constant 0 : i32
    return %arg1, %c0_i32, %c0_i32_0, %c0_i32_1 : i32, i32, i32, i32
  }
  func.func @transform_5(%arg0: i32, %arg1: i32) -> (i32, i32, i32) {
    %c0_i32 = arith.constant 0 : i32
    %c0_i32_0 = arith.constant 0 : i32
    %c0_i32_1 = arith.constant 0 : i32
    return %arg1, %c0_i32, %c0_i32_0 : i32, i32, i32
  }
  func.func @transform_6(%arg0: i32, %arg1: i32) -> (i32, i32, i32) {
    %c0_i32 = arith.constant 0 : i32
    %c0_i32_0 = arith.constant 0 : i32
    %c0_i32_1 = arith.constant 0 : i32
    return %arg1, %c0_i32, %c0_i32_0 : i32, i32, i32
  }
  func.func @transform_7(%arg0: i32, %arg1: i32) -> (i32, i32) {
    %c0_i32 = arith.constant 0 : i32
    %c0_i32_0 = arith.constant 0 : i32
    %c0_i32_1 = arith.constant 0 : i32
    return %c0_i32, %c0_i32_0 : i32, i32
  }
  func.func @transform_8(%arg0: i32, %arg1: i32) -> (i32, i32) {
    %c0_i32 = arith.constant 0 : i32
    %c0_i32_0 = arith.constant 0 : i32
    %c0_i32_1 = arith.constant 0 : i32
    return %c0_i32, %c0_i32_0 : i32, i32
  }
  func.func @transform_9(%arg0: i32, %arg1: i32) -> (i32, i32, i32) {
    %c0_i32 = arith.constant 0 : i32
    %c0_i32_0 = arith.constant 0 : i32
    %c0_i32_1 = arith.constant 0 : i32
    return %arg0, %c0_i32, %c0_i32_0 : i32, i32, i32
  }
}

</mosaic_0001>

<bundles_post_ra>
// kernel: tpu_custom_call.1
= control target key start
LH: loop header
LB: loop body
LE: loop exit
PB: predicated region body
PF: predicated region fallthrough
CT: control target
= control target key end

     0   :  { %s2827_s0 = inlined_call_operand.hbm [shape: f32[2,8,32], index: 0, kind: input, shape index: {}]   ;;  %s2828_s1 = inlined_call_operand.hbm [shape: f32[8,32], index: 1, kind: input, shape index: {}]   ;;  %s2829_s2 = inlined_call_operand.vmem [shape: bf16[2,32,96], index: 2, kind: input, shape index: {}]   ;;  %s2830_s3 = inlined_call_operand.hbm [shape: f32[2,8,128], index: 3, kind: input, shape index: {}]   ;;  %s2831_s4 = inlined_call_operand.vmem [shape: bf16[2,4,8,32], index: 4, kind: input, shape index: {}]   ;;  %s2832_s5 = inlined_call_operand.vmem [shape: bf16[2,32,64], index: 5, kind: input, shape index: {}]   ;;  %s2833_s6 = inlined_call_operand.vmem [shape: bf16[2,64,32], index: 6, kind: input, shape index: {}]   ;;  %s2834_s7 = inlined_call_operand.vmem [shape: bf16[32,128], index: 7, kind: input, shape index: {}]   ;;  %s2835_s8 = inlined_call_operand.vmem [shape: f32[1,128], index: 8, kind: input, shape index: {}]   ;;  %s2836_s9 = inlined_call_operand.hbm [shape: f32[2,8,128], index: 9, kind: output, shape index: {}]  }
   0x1   :  { %2855 = sst [smem:[#allocation21_spill]] %s2827_s0 }
   0x2   :  { %2856 = sst [smem:[#allocation22_spill]] %s2828_s1 }
   0x3   :  { %2857 = sst [smem:[#allocation23_spill]] %s2830_s3 }
   0x4   :  { %2858 = sst [smem:[#allocation24_spill]] %s2833_s6 }
   0x5   :  { %2859 = sst [smem:[#allocation25_spill]] %s2834_s7 }
   0x6   :  { %2860 = sst [smem:[#allocation26_spill]] %s2835_s8 }
   0x7   :  { %2861 = sst [smem:[#allocation27_spill]] %s2836_s9 }
   0x8   :  { %14 = vsyncpa [#allocation4], 0 }
   0x9   :  { %16 = vsyncpa [#allocation4 + $0x1], 0 }
   0xa   :  { %17 = vsyncpa [#allocation7], 0 }
   0xb   :  { %18 = vsyncpa [#allocation5], 0 }
   0xc   :  { %20 = vsyncpa [#allocation5 + $0x1], 0  ;;  %s2315_s30 = smov 0   ;;  %s2317_s10 = smov 0  }
   0xd   :  { %s2319_s11 = smov 0   ;;  %s2321_s12 = smov 0  }
   0xe   :  { %s2323_s13 = smov 0   ;;  %s2325_s14 = smov 0  }
   0xf   :  { %s2327_s15 = smov 0   ;;  %s2329_s16 = smov 0  }
  0x10   :  { %s2331_s17 = smov 0   ;;  %s2333_s18 = smov 0  }
  0x11   :  { %s2335_s19 = smov 0  }
  0x12 LB: > { %2862 = sst [smem:[#allocation14_spill]] %s2216_s12  ;;  %p52_p0 = scmp.ne.s32.totalorder %s2224_s14, %s2220_s13  ;;  %s2244_s19 = sphi %s2335_s19, %s26_s19   ;;  %s2240_s18 = sphi %s2333_s18, %s2907_s18   ;;  %s2236_s17 = sphi %s2331_s17, %s2915_s17   ;;  %s2232_s16 = sphi %s2329_s16, %s2905_s16   ;;  %s2228_s15 = sphi %s2327_s15, %s2914_s15   ;;  %s2224_s14 = sphi %s2325_s14, %s2913_s14   ;;  %s2220_s13 = sphi %s2323_s13, %s2912_s13   ;;  %s2216_s12 = sphi %s2321_s12, %s2911_s12   ;;  %s2212_s11 = sphi %s2319_s11, %s2910_s11   ;;  %s2208_s10 = sphi %s2317_s10, %s2909_s10   ;;  %s2204_s30 = sphi %s2315_s30, %s2908_s30  }
  0x13   : > { %2863 = sst [smem:[#allocation15_spill]] %s2232_s16  ;;  %p2839_p1 = scmp.eq.s32.totalorder %s2244_s19, 0 }
  0x14   : > { %2864 = sst [smem:[#allocation16_spill]] %s2240_s18  ;;  %p2838_p2 = scmp.lt.s32.totalorder %s2244_s19, 4 }
  0x15   : > { %p54_p3 = por %p2839_p1, %p52_p0  ;;  %s318_s22 = sand.u32 1, %s2244_s19  }
  0x16   : > { %s320_s23 = sand.u32 1, %s2224_s14   ;;  %s1661_s25 = sshll.u32 %s2240_s18, 7 }
  0x17   : > { %s1660_s24 = sshll.u32 %s320_s23, 3  ;;  %s2865_s0 = sld [smem:[#allocation21_spill]] }
  0x18   : > { %s322_s29 = scalar_lea.vmem [#allocation3], %s1660_s24  ;;  %p2391_p4 = pnand %p2838_p2, %p54_p3 }
  0x19   : > { %s329_s21 = sshll.u32 %s322_s29, 4  ;;  %s2397_s23 = scalar_lea.sflag [#allocation4], %s318_s22  ;;  %s2395_s21 = int_to_ptr.vmem [resolvable:$true] %s329_s21 }
  0x1a   : > { %p2028_p6 = pneg %p2391_p4 }
  0x1d   : > { %s2387_s28 = scalar_lea.hbm %s2865_s0, %s1661_s25  ;;  %s2031_s27 = scalar_lea.hbm %s2865_s0, 256 }
  0x1e   : > { %s2026_s26 = scalar_lea.hbm %s2387_s28, 128  ;;  %p2032_p9 = scmp.lt.u32.totalorder %s2387_s28, %s2865_s0 }
  0x1f   : > { %p2027_p5 = scmp.ne.s32.totalorder %s2387_s28, %s2026_s26  ;;  %p2033_p10 = scmp.lt.u32.totalorder %s2031_s27, %s2026_s26 }
  0x20   : > { %p2035_p12 = scmp.lt.u32.totalorder %s2026_s26, %s2387_s28 }
  0x21   : > { %p2029_p7 = pnand %p2028_p6, %p2027_p5  ;;  %p2034_p11 = por %p2033_p10, %p2032_p9 }
  0x23   : > { %p2030_p8 = pneg %p2029_p7  ;;  %p2036_p13 = por %p2035_p12, %p2034_p11 }
  0x25   : > { %p2037_p3 = pnand %p2036_p13, %p2030_p8 }
  0x27   : > { %2040 = shalt.err (!%p2037_p3)
}
  0x28   : > { %s2041_s22 = scalar_lea.vmem %s2395_s21, 128  ;;  %s2246_s24 = smov [#allocation3]  }
  0x29   : > { %p2042_p5 = scmp.ne.s32.totalorder %s2395_s21, %s2041_s22  ;;  %s2046_s25 = sshll.u32 %s2246_s24, 4  ;;  %s2047_s25 = int_to_ptr.vmem [resolvable:$false] %s2046_s25 }
  0x2a   : > { %s2048_s9 = scalar_lea.vmem %s2047_s25, 256  ;;  %p2049_p1 = scmp.lt.s32.totalorder %s2395_s21, %s2047_s25 }
  0x2b   : > { %p2044_p7 = pnand %p2042_p5, %p2028_p6  ;;  %p2050_p9 = scmp.lt.s32.totalorder %s2048_s9, %s2041_s22 }
  0x2d   : > { %p2045_p2 = pneg %p2044_p7  ;;  %p2051_p10 = por %p2050_p9, %p2049_p1 }
  0x2f   : > { %p2052_p11 = pnand %p2051_p10, %p2045_p2 }
  0x31   : > { %2055 = shalt.err (!%p2052_p11)
}
  0x32   : > { %1880 = dma.hbm_to_vmem [thread:$0]  (!%p2391_p4), %s2387_s28, 128, %s2395_s21, %s2397_s23  }
  0x33   : > { %s2426_s26 = sadd.s32 4294967295, %s2244_s19   ;;  %s1656_s20 = sadd.s32 4294967294, %s2244_s19  }
  0x34   : > { %p58_p1 = scmp.ne.s32.totalorder %s2220_s13, %s2216_s12  ;;  %p2845_p2 = scmp.eq.s32.totalorder %s2426_s26, 0 }
  0x35   : > { %p131_p6 = scmp.ne.s32.totalorder %s2208_s10, %s2204_s30  ;;  %p275_p8 = scmp.eq.s32.totalorder %s2426_s26, 3 }
  0x36   : > { %p2437_p12 = por %p2845_p2, %p58_p1  ;;  %p281_p4 = scmp.eq.s32.totalorder %s1656_s20, 3 }
  0x37   : > { %p2443_p13 = por %p131_p6, %p2845_p2  ;;  %p2450_p3 = por %p275_p8, %p52_p0 }
  0x38   : > { %s2867_s27 = scalar_select %p2437_p12, 1, 0 }
  0x39   : > { %s2868_s21 = scalar_select %p2443_p13, 1, 0 }
  0x3a   : > { %s2869_s28 = scalar_select %p2450_p3, 1, 0 }
  0x3b   : > { %p2454_p5 = por %p281_p4, %p58_p1  ;;  %p1657_p7 = scmp.ge.s32.totalorder %s2244_s19, 1 }
  0x3c   : > { %2870 = sst [smem:[#allocation17_spill]] %s2869_s28  ;;  %p288_p9 = scmp.lt.s32.totalorder %s2244_s19, 5 }
  0x3d   : > { %s2871_s30 = scalar_select %p2454_p5, 1, 0 }
  0x3e   : > { %p2460_p10 = pnand %p1657_p7, %p288_p9  ;;  %s2247_s22 = smov [#allocation6]  }
  0x3f   : > { %2872 = sst [smem:[#allocation18_spill]] %s2871_s30  ;;  %s301_s24 = sshll.u32 %s2247_s22, 4  ;;  %s302_s24 = int_to_ptr.vmem [resolvable:$true] %s301_s24 }
  0x40   : > { %s2873_s29 = scalar_select %p2460_p10, 1, 0 }
  0x41   : > { %p1873_p11 = pneg %p2460_p10  ;;  %s35_s25 = sadd.s32 1, %s2236_s17 }
  0x42   : > { %p2473_p1 = scmp.ge.s32.totalorder %s35_s25, 2  ;;  %s346_s30 = sand.u32 1, %s2212_s11  }
  0x43   : > { %p2469_p0 = pnand %p1873_p11, %p2845_p2  ;;  %s2876_s1 = sld [smem:[#allocation22_spill]] }
  0x44   : > { %s2875_s20 = scalar_select %p2473_p1, 1, 0 }
  0x45   : > { %p2058_p4 = pneg %p2469_p0 }
  0x49   : > { %s2056_s22 = scalar_lea.hbm %s2876_s1, 128 }
  0x4a   : > { %p2057_p8 = scmp.ne.s32.totalorder %s2876_s1, %s2056_s22  ;;  %p2063_p11 = scmp.lt.u32.totalorder %s2056_s22, %s2876_s1 }
  0x4c   : > { %p2059_p7 = pnand %p2058_p4, %p2057_p8 }
  0x4e   : > { %p2060_p9 = pneg %p2059_p7 }
  0x50   : > { %p2065_p2 = pnand %p2063_p11, %p2060_p9 }
  0x52   : > { %2068 = shalt.err (!%p2065_p2)
}
  0x53   : > { %s2069_s0 = scalar_lea.vmem %s302_s24, 128  ;;  %p2077_p13 = scmp.lt.s32.totalorder %s302_s24, %s302_s24 }
  0x54   : > { %p2070_p6 = scmp.ne.s32.totalorder %s302_s24, %s2069_s0  ;;  %p2078_p12 = scmp.lt.s32.totalorder %s2069_s0, %s2069_s0 }
  0x56   : > { %p2072_p5 = pnand %p2070_p6, %p2058_p4  ;;  %p2079_p10 = por %p2078_p12, %p2077_p13 }
  0x58   : > { %p2073_p3 = pneg %p2072_p5 }
  0x5a   : > { %p2080_p1 = pnand %p2079_p10, %p2073_p3 }
  0x5c   : > { %2083 = shalt.err (!%p2080_p1)
}
  0x5d   : > { %1876 = dma.hbm_to_vmem [thread:$0]  (!%p2469_p0), %s2876_s1, 128, %s302_s24, [#allocation7]  }
  0x5e   : > { %p2877_p2 = scmp.ne.s32.totalorder %s2875_s20, 0  ;;  %s2879_s0 = sadd.s32 1, %s2240_s18 }
  0x5f   : > { %p2880_p12 = scmp.eq.s32.totalorder %s2244_s19, 0  ;;  %p2881_p13 = scmp.ne.s32.totalorder %s2212_s11, %s2208_s10 }
  0x60   : > { %s2917_s25 = smov (%p2877_p2, %s35_s25), 0  ;;  %s2919_s0 = smov (!%p2877_p2, %s2879_s0), %s2240_s18 }
  0x61   : > { %2878 = sst [smem:[#allocation19_spill]] %s2917_s25  ;;  %s115_s6 = ssub.s32 %s2236_s17, %s2917_s25 }
  0x62   : > { %p127_p3 = por %p2881_p13, %p2880_p12  ;;  %p40_p5 = scmp.ge.s32.totalorder %s2919_s0, 2 }
  0x63   : > { %p116_p10 = scmp.eq.s32.totalorder %s115_s6, 0  ;;  %s1662_s7 = sshll.u32 %s346_s30, 3 }
  0x64   : > { %s1663_s16 = sshll.u32 %s2236_s17, 7  ;;  %s2921_s0 = smov (%p40_p5, %s2919_s0), 0 }
  0x65   : > { %2882 = sst [smem:[#allocation20_spill]] %s2921_s0  ;;  %s2883_s28 = sadd.s32 1, %s2212_s11 }
  0x66   : > { %s2519_s24 = scalar_select %p116_p10, %s2212_s11, %s2883_s28  }
  0x67   : > { %s42_s9 = ssub.s32 %s2240_s18, %s2921_s0  ;;  %s2884_s3 = sld [smem:[#allocation23_spill]] }
  0x68   : > { %p43_p0 = scmp.eq.s32.totalorder %s42_s9, 0  ;;  %s348_s12 = scalar_lea.vmem [#allocation8], %s1662_s7 }
  0x69   : > { %s355_s30 = sshll.u32 %s348_s12, 4  ;;  %p2885_p1 = scmp.lt.s32.totalorder %s2244_s19, 4  ;;  %s356_s30 = int_to_ptr.vmem [resolvable:$true] %s355_s30 }
  0x6a   : > { %s2887_s28 = sadd.s32 1, %s2224_s14 }
  0x6b   : > { %p2530_p6 = pnand %p2885_p1, %p127_p3 }
  0x6c   : > { %s2537_s9 = scalar_select %p43_p0, %s2224_s14, %s2887_s28  }
  0x6d   : > { %s2526_s8 = scalar_lea.hbm %s2884_s3, %s1663_s16  ;;  %p2086_p4 = pneg %p2530_p6 }
  0x6e   : > { %s2084_s20 = scalar_lea.hbm %s2526_s8, 128  ;;  %s2089_s22 = scalar_lea.hbm %s2884_s3, 256 }
  0x6f   : > { %p2085_p8 = scmp.ne.s32.totalorder %s2526_s8, %s2084_s20  ;;  %p2090_p11 = scmp.lt.u32.totalorder %s2526_s8, %s2884_s3 }
  0x70   : > { %p2091_p2 = scmp.lt.u32.totalorder %s2089_s22, %s2084_s20  ;;  %p2093_p13 = scmp.lt.u32.totalorder %s2084_s20, %s2526_s8 }
  0x71   : > { %p2087_p7 = pnand %p2086_p4, %p2085_p8 }
  0x72   : > { %p2092_p12 = por %p2091_p2, %p2090_p11 }
  0x73   : > { %p2088_p9 = pneg %p2087_p7 }
  0x74   : > { %p2094_p3 = por %p2093_p13, %p2092_p12 }
  0x76   : > { %p2095_p5 = pnand %p2094_p3, %p2088_p9 }
  0x78   : > { %2098 = shalt.err (!%p2095_p5)
}
  0x79   : > { %s2099_s28 = scalar_lea.vmem %s356_s30, 128  ;;  %s2248_s0 = smov [#allocation8]  }
  0x7a   : > { %p2100_p10 = scmp.ne.s32.totalorder %s356_s30, %s2099_s28  ;;  %s2104_s7 = sshll.u32 %s2248_s0, 4  ;;  %s2105_s7 = int_to_ptr.vmem [resolvable:$false] %s2104_s7 }
  0x7b   : > { %s2106_s16 = scalar_lea.vmem %s2105_s7, 256  ;;  %p2107_p8 = scmp.lt.s32.totalorder %s356_s30, %s2105_s7 }
  0x7c   : > { %p2102_p0 = pnand %p2100_p10, %p2086_p4  ;;  %p2108_p7 = scmp.lt.s32.totalorder %s2106_s16, %s2099_s28 }
  0x7e   : > { %p2103_p1 = pneg %p2102_p0  ;;  %p2109_p2 = por %p2108_p7, %p2107_p8 }
  0x80   : > { %p2110_p11 = pnand %p2109_p2, %p2103_p1 }
  0x82   : > { %2113 = shalt.err (!%p2110_p11)
}
  0x83   : > { %1883 = dma.hbm_to_vmem [thread:$0]  (!%p2530_p6), %s2526_s8, 128, %s356_s30, %s2397_s23  }
  0x84   : > { %p2888_p9 = scmp.ne.s32.totalorder %s2873_s29, 0 }
  0x85   : > { %s390_s1 = sand.u32 (!%p2888_p9), 1, %s2426_s26   ;;  %s2852_s0 = sand.u32 (!%p2888_p9), 1, %s2220_s13  }
  0x86   : > { %388 = sbr.rel (%p2888_p9) target bundleno = 4379 (0x111b), region = 56  ;;  %s2567_s20 = sshll.u32 (!%p2888_p9), %s2852_s0, 3 }
  0x87   : > { %s391_s22 = scalar_lea.sflag (!%p2888_p9), [#allocation4], %s390_s1  ;;  %s394_s12 = scalar_lea.vmem (!%p2888_p9), [#allocation3], %s2567_s20 }
  0x88   : > { %p2889_p4 = scmp.ne.s32.totalorder (!%p2888_p9), %s2867_s27, 0 }
  0x8d   : > { %2187 = dma.done.wait (%p2889_p4), %s391_s22, 128  }
  0x8e   : > { %2189 = vsyncadd (%p2889_p4), %s391_s22, 4294967168  ;;  %p2890_p6 = scmp.eq.s32.totalorder %s2426_s26, 0 }
  0x90   : > { %2191 = dma.done.wait (%p2890_p6), [#allocation7], 128   ;;  %p2891_p12 = pmov %p2890_p6 }
  0x91   : > { %s405_s23 = sand.u32 1, %s2208_s10   ;;  %p2892_p13 = scmp.ne.s32.totalorder %s2868_s21, 0 }
  0x92   : > { %2193 = vsyncadd (%p2891_p12), [#allocation7], 4294967168  ;;  %s2579_s29 = sshll.u32 %s405_s23, 3 }
  0x93   : > { %2195 = dma.done.wait (%p2892_p13), %s391_s22, 128  }
  0x94   : > { %2197 = vsyncadd (%p2892_p13), %s391_s22, 4294967168  ;;  %p467_p3 = scmp.lt.s32.totalorder %s2228_s15, 1  ;;  %s2893_s25 = sld [smem:[#allocation24_spill]] }
  0x95   : > { %p1677_p5 = scmp.ne.s32.totalorder %s2228_s15, 0 }
  0x96   : > { %s468_s27 = scalar_select %p467_p3, %s2228_s15, 1 }
  0x97   : > { %491 = sbr.rel (%p1677_p5) target bundleno = 158 (0x9e), region = 72  ;;  %v492_v0 = vld [vmem:[%s394_s12] sm:$0xff] (!%p1677_p5)  ;;  %v494_v1 = vld [vmem:[#allocation6] sm:$0xff] (!%p1677_p5)  ;;  %vm496_vm0 = vcmask (!%p1677_p5), 261120  }
  0x98   : > { %s1713_s30 = sshll.u32 %s468_s27, 4  ;;  %s1716_s26 = sshll.u32 %s468_s27, 5  ;;  %v493_v2 = vmul.f32 (!%p1677_p5), 5.656854, %v492_v0 }
  0x99   : > { %s471_s7 = scalar_lea.vmem %s2829_s2, %s1713_s30  ;;  %s2594_s23 = scalar_lea.vmem %s2831_s4, %s1713_s30 }
  0x9a   : > { %s2599_s21 = scalar_lea.vmem %s2832_s5, %s1713_s30  ;;  %s2604_s18 = scalar_lea.vmem %s2893_s25, %s1716_s26  ;;  %v495_v3 = vadd.f32 (!%p1677_p5), %v494_v1, %v493_v2 }
  0x9b   : > { %s466_s27 = scalar_lea.vmem [#allocation9], %s2567_s20 }
  0x9c   : > { %497 = vst.msk [vmem:[#allocation2] sm:$0xff] (!%p1677_p5), %vm496_vm0, %v495_v3 }
  0x9e PF: > { %v1996_v4 = vld [vmem:[%s471_s7] sm:$0xff]   ;;  %v2249_v5 = vmov 0.0   ;;  %v1997_v6 = vld [vmem:[%s471_s7 + $0x8] sm:$0xff]   ;;  %vm2250_vm1 = vmmov 0   ;;  %vm521_vm2 = vcmask 261120   ;;  %v505_v9 = vlaneseq  ;;  %s2894_s3 = scalar_lea.vmem [#allocation8], %s2579_s29 }
  0x9f   : > { %1755 = vmatprep.subr.bf16.mxu1 %v2249_v5  ;;  %1769 = vmatprep.subr.bf16.mxu0 %v2249_v5  ;;  %v2628_v12 = vld [vmem:[%s2894_s3] sm:$0xff]  ;;  %s2251_s25 = smov 64   ;;  %s2252_s0 = smov 96   ;;  %vm576_vm3 = vcmask 64512   ;;  %vm640_vm4 = vcmask 1043456   ;;  %vm1341_vm5 = vcmask 523264  }
  0xa0   : > { %1756 = vmatpush3.bf16.msra.mxu1 %v1996_v4  ;;  %1759 = vmatprep.mubr.msk.bf16.mxu1 %vm2250_vm1, %v2249_v5  ;;  %v2623_v10 = vshrl.u32 %v505_v9, 7  ;;  %s2253_s12 = smov 56   ;;  %s2254_s29 = smov 88   ;;  %v685_v36 = vld [vmem:[%s2594_s23] sm:$0xf] }
  0xa1   : > { %1757 = vmatprep.subr.bf16.mxu1 %v2249_v5  ;;  %1771 = vmatprep.mubr.msk.bf16.mxu0 %vm2250_vm1, %v2249_v5  ;;  %s2255_s8 = smov 120   ;;  %v690_v37 = vsel %vm640_vm4, %v685_v36, 0  ;;  %s2256_s30 = smov 80  }
  0xa2   : > { %v507_v11 = vsub.s32 0, %v2623_v10  ;;  %s2257_s26 = smov 112   ;;  %s2258_s6 = smov 48  }
  0xa3   : > { %v2612_v7 = vld [vmem:[#allocation2] sm:$0xff]  ;;  %s2259_s28 = smov 72   ;;  %s2260_s7 = smov 104  }
  0xa4   : > { %v500_v8 = vpack.c.bf16 %v2612_v7, %v2612_v7  ;;  %1758 = vmatpush3.bf16.msra.mxu1 %v1997_v6  ;;  %v508_v13 = vrot.slane %v2628_v12, %v507_v11  ;;  %s2261_s16 = smov 40   ;;  %p1704_p10 = scmp.ne.s32.totalorder %s2228_s15, 1 }
  0xa5   : > { %1763 = vmatprep.subr.bf16.mxu1 %v2249_v5  ;;  %vm2263_vm6 = vmmov (!%p1704_p10), 0  }
  0xa7   : > { %1760 = vmatmul.mubr.msk.bf16.vlgmr.msra.gmra.mrb[0].mxu1 %vm521_vm2, %v500_v8 }
  0xa8   : > { %1765 = vmatprep.mubr.msk.bf16.mxu1 %vm2250_vm1, %v2249_v5 }
 0x17a   : > { %v559_v14 = vpop.f32.mrb[0].mxu1 }
 0x17b   : > { %v560_v15 = vadd.f32 %v559_v14, %v508_v13  ;;  %v1761_v16 = vpop.f32.mrb[1].mxu1  ;;  %v1686_v13 = vld [vmem:[%s2594_s23 + $0x4] sm:$0xf] }
 0x17c   : > { %v562_v17 = vpop.f32.mrb[2].mxu1  ;;  %v851_v14 = vsel %vm640_vm4, %v1686_v13, 0 }
 0x17d   : > { %v2631_v18 = vpack.c.bf16 %v560_v15, %v560_v15  ;;  %v1762_v19 = vpop.f32.mrb[3].mxu1  ;;  %v565_v24 = vmul.f32 0.35355338, %v560_v15 }
 0x17f   : > { %635 = vrot.lane.b32.xlu1 %v2631_v18, %s2251_s25  ;;  %574 = vrot.lane.b32.xlu0 %v2631_v18, %s2252_s0  ;;  %v2639_v25 = vpack.c.bf16 %v565_v24, %v565_v24  ;;  %s2896_s25 = sld [smem:[#allocation26_spill]] (!%p1704_p10) }
 0x1f1   : > { %v636_v20 = vpop.permute.xlu1 %635  ;;  %v575_v21 = vpop.permute.xlu0 %574 }
 0x1f2   : > { %v581_v22 = vsel %vm576_vm3, %v575_v21, 0  ;;  %v642_v23 = vsel %vm640_vm4, %v636_v20, 0 }
 0x1f3   : > { %1764 = vmatpush3.bf16.xpose.msra.mxu1 %v581_v22  ;;  %1770 = vmatpush3.bf16.msra.mxu0 %v642_v23 }
 0x1f4   : > { %1781 = vmatprep.subr.bf16.mxu0 %v2249_v5  ;;  %1775 = vmatprep.subr.bf16.mxu1 %v2249_v5 }
 0x1fa   : > { %1766 = vmatmul.mubr.msk.bf16.vlgmr.msra.gmra.mrb[4].mxu1 %vm576_vm3, %v2639_v25 }
 0x1fb   : > { %1777 = vmatprep.mubr.msk.bf16.mxu1 %vm2250_vm1, %v2249_v5  ;;  %1776 = vmatpush3.bf16.msra.mxu1 %v690_v37 }
 0x1fc   : > { %1787 = vmatprep.subr.bf16.mxu1 %v2249_v5 }
 0x2cd   : > { %v617_v26 = vpop.f32.mrb[4].mxu1 }
 0x2ce   : > { %v1767_v27 = vpop.f32.mrb[5].mxu1  ;;  %v623_v28 = vsel %vm576_vm3, %v617_v26, -inf }
 0x2cf   : > { %624 = vmax.xlane.f32.xlu0 %v623_v28  ;;  %v620_v29 = vpop.f32.mrb[6].mxu1 }
 0x2d0   : > { %v1768_v30 = vpop.f32.mrb[7].mxu1 }
 0x2e5   : > { %796 = vrot.lane.b32.xlu0 %v2631_v18, %s2253_s12 }
 0x35c   : > { %v625_v31 = vpop.xlane.xlu0 %624 }
 0x35d   : > { %v626_v32 = vsub.f32 %v617_v26, %v625_v31 }
 0x35f   : > { %v627_v33 = vmul.f32 1.442695, %v626_v32 }
 0x360   : > { %v797_v45 = vpop.permute.xlu0 %796 }
 0x361   : > { %2004 = vpow2.f32 %v627_v33  ;;  %v802_v50 = vsel %vm640_vm4, %v797_v45, 0 }
 0x36b   : > { %v2005_v34 = vpop.eup %2004 }
 0x36c   : > { %v629_v35 = vsel %vm576_vm3, %v2005_v34, 0.0 }
 0x36d   : > { %630 = vadd.xlane.f32.xlu1 %v629_v35 }
 0x37e   : > { %736 = vrot.lane.b32.xlu1 %v2631_v18, %s2254_s29 }
 0x382   : > { %734 = vrot.lane.b32.xlu1 %v2639_v25, %s2255_s8 }
 0x3fa   : > { %v631_v38 = vpop.xlane.xlu1 %630 }
 0x3fb   : > { %2006 = vrcp.f32 %v631_v38 }
 0x3fe   : > { %v737_v41 = vpop.permute.xlu1 %736 }
 0x3ff   : > { %v742_v43 = vsel %vm576_vm3, %v737_v41, 0 }
 0x402   : > { %v735_v44 = vpop.permute.xlu1 %734 }
 0x405   : > { %v2007_v39 = vpop.eup %2006 }
 0x406   : > { %v633_v40 = vmul.f32 %v2007_v39, %v2005_v34  ;;  %v568_v34 = vsub.s32 1, %v2623_v10 }
 0x408   : > { %v634_v42 = vpack.c.bf16 %v633_v40, %v633_v40  ;;  %v569_v35 = vrot.slane %v2628_v12, %v568_v34 }
 0x40a   : > { %1772 = vmatmul.mubr.msk.bf16.vlgmr.msra.gmra.mrb[0].mxu0 %vm576_vm3, %v634_v42 }
 0x40b   : > { %1782 = vmatpush3.bf16.xpose.msra.mxu0 %v742_v43  ;;  %1783 = vmatprep.mubr.msk.bf16.mxu0 %vm2250_vm1, %v2249_v5 }
 0x40c   : > { %1793 = vmatprep.subr.bf16.mxu0 %v2249_v5 }
 0x412   : > { %1784 = vmatmul.mubr.msk.bf16.vlgmr.msra.gmra.mrb[4].mxu0 %vm576_vm3, %v735_v44 }
 0x413   : > { %1795 = vmatprep.mubr.msk.bf16.mxu0 %vm2250_vm1, %v2249_v5  ;;  %1794 = vmatpush3.bf16.msra.mxu0 %v851_v14 }
 0x414   : > { %1805 = vmatprep.subr.bf16.mxu0 %v2249_v5 }
 0x4dd   : > { %v678_v46 = vpop.f32.mrb[0].mxu0 }
 0x4de   : > { %v684_v47 = vpack.c.bf16 %v678_v46, %v678_v46  ;;  %v1773_v48 = vpop.f32.mrb[1].mxu0 }
 0x4df   : > { %v681_v49 = vpop.f32.mrb[2].mxu0  ;;  %v1690_v48 = vld [vmem:[%s2594_s23 + $0x8] sm:$0xf] }
 0x4e0   : > { %v1774_v51 = vpop.f32.mrb[3].mxu0  ;;  %1778 = vmatmul.mubr.msk.bf16.vlgmr.msra.gmra.mrb[8].mxu1 %vm576_vm3, %v684_v47  ;;  %v1011_v49 = vsel %vm640_vm4, %v1690_v48, 0 }
 0x4e1   : > { %1788 = vmatpush3.bf16.msra.mxu1 %v802_v50  ;;  %1789 = vmatprep.mubr.msk.bf16.mxu1 %vm2250_vm1, %v2249_v5 }
 0x4e2   : > { %1799 = vmatprep.subr.bf16.mxu1 %v2249_v5 }
 0x4e5   : > { %v778_v52 = vpop.f32.mrb[4].mxu0 }
 0x4e6   : > { %v1785_v53 = vpop.f32.mrb[5].mxu0  ;;  %v784_v54 = vsel %vm576_vm3, %v778_v52, -inf }
 0x4e7   : > { %785 = vmax.xlane.f32.xlu1 %v784_v54  ;;  %v781_v55 = vpop.f32.mrb[6].mxu0 }
 0x4e8   : > { %v1786_v56 = vpop.f32.mrb[7].mxu0 }
 0x574   : > { %v786_v57 = vpop.xlane.xlu1 %785 }
 0x575   : > { %v787_v58 = vsub.f32 %v778_v52, %v786_v57 }
 0x577   : > { %v788_v59 = vmul.f32 1.442695, %v787_v58 }
 0x579   : > { %2008 = vpow2.f32 %v788_v59 }
 0x583   : > { %v2009_v60 = vpop.eup %2008 }
 0x584   : > { %v790_v61 = vsel %vm576_vm3, %v2009_v60, 0.0 }
 0x585   : > { %791 = vadd.xlane.f32.xlu0 %v790_v61 }
 0x59b   : > { %896 = vrot.lane.b32.xlu0 %v2631_v18, %s2256_s30 }
 0x59f   : > { %894 = vrot.lane.b32.xlu0 %v2639_v25, %s2257_s26 }
 0x5b3   : > { %v726_v62 = vpop.f32.mrb[8].mxu1 }
 0x5b4   : > { %v1779_v63 = vpop.f32.mrb[9].mxu1  ;;  %v732_v36 = vadd.f32 %v726_v62, %v569_v35 }
 0x5b5   : > { %v729_v0 = vpop.f32.mrb[10].mxu1 }
 0x5b6   : > { %v1780_v1 = vpop.f32.mrb[11].mxu1 }
 0x5b7   : > { %v1694_v1 = vld [vmem:[%s2594_s23 + $0xc] sm:$0xf]  ;;  %s2895_s23 = sld [smem:[#allocation25_spill]] (!%p1704_p10) }
 0x612   : > { %v792_v2 = vpop.xlane.xlu0 %791 }
 0x613   : > { %2010 = vrcp.f32 %v792_v2  ;;  %v1171_v2 = vsel %vm640_vm4, %v1694_v1, 0 }
 0x616   : > { %v897_v6 = vpop.permute.xlu0 %896 }
 0x617   : > { %v902_v9 = vsel %vm576_vm3, %v897_v6, 0 }
 0x61a   : > { %v895_v11 = vpop.permute.xlu0 %894 }
 0x61d   : > { %v2011_v3 = vpop.eup %2010 }
 0x61e   : > { %v794_v4 = vmul.f32 %v2011_v3, %v2009_v60 }
 0x620   : > { %v795_v8 = vpack.c.bf16 %v794_v4, %v794_v4 }
 0x622   : > { %1790 = vmatmul.mubr.msk.bf16.vlgmr.msra.gmra.mrb[12].mxu1 %vm576_vm3, %v795_v8 }
 0x623   : > { %1800 = vmatpush3.bf16.xpose.msra.mxu1 %v902_v9  ;;  %1801 = vmatprep.mubr.msk.bf16.mxu1 %vm2250_vm1, %v2249_v5 }
 0x624   : > { %1811 = vmatprep.subr.bf16.mxu1 %v2249_v5 }
 0x62a   : > { %1802 = vmatmul.mubr.msk.bf16.vlgmr.msra.gmra.mrb[16].mxu1 %vm576_vm3, %v895_v11 }
 0x62b   : > { %1813 = vmatprep.mubr.msk.bf16.mxu1 %vm2250_vm1, %v2249_v5  ;;  %1812 = vmatpush3.bf16.msra.mxu1 %v1011_v49 }
 0x62c   : > { %1823 = vmatprep.subr.bf16.mxu1 %v2249_v5 }
 0x6f5   : > { %v838_v15 = vpop.f32.mrb[12].mxu1 }
 0x6f6   : > { %v844_v16 = vpack.c.bf16 %v838_v15, %v838_v15  ;;  %v1791_v17 = vpop.f32.mrb[13].mxu1 }
 0x6f7   : > { %v841_v19 = vpop.f32.mrb[14].mxu1 }
 0x6f8   : > { %v1792_v20 = vpop.f32.mrb[15].mxu1  ;;  %1796 = vmatmul.mubr.msk.bf16.vlgmr.msra.gmra.mrb[8].mxu0 %vm576_vm3, %v844_v16 }
 0x6f9   : > { %1807 = vmatprep.mubr.msk.bf16.mxu0 %vm2250_vm1, %v2249_v5 }
 0x6fd   : > { %v938_v21 = vpop.f32.mrb[16].mxu1 }
 0x6fe   : > { %v1803_v22 = vpop.f32.mrb[17].mxu1  ;;  %v944_v23 = vsel %vm576_vm3, %v938_v21, -inf }
 0x6ff   : > { %945 = vmax.xlane.f32.xlu1 %v944_v23  ;;  %v941_v24 = vpop.f32.mrb[18].mxu1 }
 0x700   : > { %v1804_v26 = vpop.f32.mrb[19].mxu1 }
 0x710   : > { %956 = vrot.lane.b32.xlu1 %v2631_v18, %s2258_s6 }
 0x714   : > { %1056 = vrot.lane.b32.xlu1 %v2631_v18, %s2259_s28 }
 0x718   : > { %1054 = vrot.lane.b32.xlu1 %v2639_v25, %s2260_s7 }
 0x78c   : > { %v946_v27 = vpop.xlane.xlu1 %945 }
 0x78d   : > { %v947_v28 = vsub.f32 %v938_v21, %v946_v27 }
 0x78f   : > { %v948_v29 = vmul.f32 1.442695, %v947_v28 }
 0x790   : > { %v957_v30 = vpop.permute.xlu1 %956 }
 0x791   : > { %2012 = vpow2.f32 %v948_v29  ;;  %v962_v31 = vsel %vm640_vm4, %v957_v30, 0 }
 0x792   : > { %1806 = vmatpush3.bf16.msra.mxu0 %v962_v31 }
 0x793   : > { %1817 = vmatprep.subr.bf16.mxu0 %v2249_v5 }
 0x794   : > { %v1057_v44 = vpop.permute.xlu1 %1056 }
 0x795   : > { %v1062_v46 = vsel %vm576_vm3, %v1057_v44, 0 }
 0x798   : > { %v1055_v47 = vpop.permute.xlu1 %1054 }
 0x79b   : > { %v2013_v32 = vpop.eup %2012 }
 0x79c   : > { %v950_v33 = vsel %vm576_vm3, %v2013_v32, 0.0 }
 0x79d   : > { %951 = vadd.xlane.f32.xlu0 %v950_v33 }
 0x7cb   : > { %v887_v25 = vpop.f32.mrb[8].mxu0 }
 0x7cc   : > { %v893_v37 = vadd.f32 %v887_v25, %v732_v36  ;;  %v1797_v38 = vpop.f32.mrb[9].mxu0  ;;  %v1998_v36 = vld [vmem:[%s2599_s21] sm:$0xff]   ;;  %v1999_v25 = vld [vmem:[%s2599_s21 + $0x8] sm:$0xff]  }
 0x7cd   : > { %v890_v39 = vpop.f32.mrb[10].mxu0 }
 0x7ce   : > { %v1798_v40 = vpop.f32.mrb[11].mxu0 }
 0x82a   : > { %v952_v41 = vpop.xlane.xlu0 %951 }
 0x82b   : > { %2014 = vrcp.f32 %v952_v41  ;;  %v1231_v41 = vsub.s32 2, %v2623_v10 }
 0x835   : > { %v2015_v42 = vpop.eup %2014 }
 0x836   : > { %v954_v43 = vmul.f32 %v2015_v42, %v2013_v32  ;;  %v1236_v42 = vsub.s32 3, %v2623_v10 }
 0x838   : > { %v955_v45 = vpack.c.bf16 %v954_v43, %v954_v43  ;;  %v1232_v43 = vrot.slane %v2628_v12, %v1231_v41 }
 0x83a   : > { %1808 = vmatmul.mubr.msk.bf16.vlgmr.msra.gmra.mrb[12].mxu0 %vm576_vm3, %v955_v45 }
 0x83b   : > { %1818 = vmatpush3.bf16.xpose.msra.mxu0 %v1062_v46  ;;  %1819 = vmatprep.mubr.msk.bf16.mxu0 %vm2250_vm1, %v2249_v5  ;;  %v1237_v46 = vrot.slane %v2628_v12, %v1236_v42 }
 0x83c   : > { %1829 = vmatprep.subr.bf16.mxu0 %v2249_v5 }
 0x842   : > { %1820 = vmatmul.mubr.msk.bf16.vlgmr.msra.gmra.mrb[16].mxu0 %vm576_vm3, %v1055_v47 }
 0x843   : > { %1831 = vmatprep.mubr.msk.bf16.mxu0 %vm2250_vm1, %v2249_v5  ;;  %1830 = vmatpush3.bf16.msra.mxu0 %v1171_v2 }
 0x844   : > { %1843 = vmatprep.subr.bf16.mxu0 %v2249_v5 }
 0x90d   : > { %v998_v50 = vpop.f32.mrb[12].mxu0 }
 0x90e   : > { %v1004_v51 = vpack.c.bf16 %v998_v50, %v998_v50  ;;  %v1809_v52 = vpop.f32.mrb[13].mxu0  ;;  %v2002_v50 = vld [vmem:[%s2604_s18 + $0x10] sm:$0xff]  }
 0x90f   : > { %v1001_v53 = vpop.f32.mrb[14].mxu0  ;;  %v1246_v52 = vsub.s32 4, %v2623_v10 }
 0x910   : > { %v1810_v54 = vpop.f32.mrb[15].mxu0  ;;  %1814 = vmatmul.mubr.msk.bf16.vlgmr.msra.gmra.mrb[20].mxu1 %vm576_vm3, %v1004_v51  ;;  %v2003_v51 = vld [vmem:[%s2604_s18 + $0x18] sm:$0xff]  }
 0x911   : > { %1825 = vmatprep.mubr.msk.bf16.mxu1 %vm2250_vm1, %v2249_v5  ;;  %v1247_v53 = vrot.slane %v2628_v12, %v1246_v52 }
 0x915   : > { %v1098_v55 = vpop.f32.mrb[16].mxu0 }
 0x916   : > { %v1821_v56 = vpop.f32.mrb[17].mxu0  ;;  %v1104_v57 = vsel %vm576_vm3, %v1098_v55, -inf }
 0x917   : > { %1105 = vmax.xlane.f32.xlu1 %v1104_v57  ;;  %v1101_v58 = vpop.f32.mrb[18].mxu0 }
 0x918   : > { %v1822_v59 = vpop.f32.mrb[19].mxu0 }
 0x9a4   : > { %v1106_v60 = vpop.xlane.xlu1 %1105 }
 0x9a5   : > { %v1107_v61 = vsub.f32 %v1098_v55, %v1106_v60 }
 0x9a7   : > { %v1108_v62 = vmul.f32 1.442695, %v1107_v61  ;;  %v1315_v61 = vsub.s32 5, %v2623_v10 }
 0x9a9   : > { %2016 = vpow2.f32 %v1108_v62  ;;  %v1316_v62 = vrot.slane %v2628_v12, %v1315_v61 }
 0x9b3   : > { %v2017_v63 = vpop.eup %2016 }
 0x9b4   : > { %v1110_v0 = vsel %vm576_vm3, %v2017_v63, 0.0 }
 0x9b5   : > { %1111 = vadd.xlane.f32.xlu0 %v1110_v0 }
 0x9cb   : > { %1116 = vrot.lane.b32.xlu0 %v2631_v18, %s2261_s16 }
 0x9e3   : > { %v1047_v3 = vpop.f32.mrb[20].mxu1 }
 0x9e4   : > { %v1053_v4 = vadd.f32 %v1047_v3, %v893_v37  ;;  %v1815_v6 = vpop.f32.mrb[21].mxu1  ;;  %v2000_v37 = vld [vmem:[%s2604_s18] sm:$0xff]  }
 0x9e5   : > { %v1050_v8 = vpop.f32.mrb[22].mxu1 }
 0x9e6   : > { %v1816_v9 = vpop.f32.mrb[23].mxu1 }
 0xa42   : > { %v1112_v11 = vpop.xlane.xlu0 %1111 }
 0xa43   : > { %2018 = vrcp.f32 %v1112_v11 }
 0xa46   : > { %v1117_v13 = vpop.permute.xlu0 %1116 }
 0xa47   : > { %v1122_v14 = vsel %vm640_vm4, %v1117_v13, 0 }
 0xa48   : > { %1824 = vmatpush3.bf16.msra.mxu1 %v1122_v14 }
 0xa49   : > { %1835 = vmatprep.subr.bf16.mxu1 %v2249_v5 }
 0xa4d   : > { %v2019_v18 = vpop.eup %2018 }
 0xa4e   : > { %v1114_v15 = vmul.f32 %v2019_v18, %v2017_v63 }
 0xa50   : > { %v1115_v16 = vpack.c.bf16 %v1114_v15, %v1114_v15 }
 0xa52   : > { %1826 = vmatmul.mubr.msk.bf16.vlgmr.msra.gmra.mrb[24].mxu1 %vm576_vm3, %v1115_v16  ;;  %v1401_v16 = vsub.s32 6, %v2623_v10 }
 0xa53   : > { %1839 = vmatprep.mubr.msk.bf16.mxu1 %vm2250_vm1, %v2249_v5  ;;  %1836 = vmatpush3.bf16.msra.mxu1 %v1998_v36 }
 0xa54   : > { %1837 = vmatprep.subr.bf16.mxu1 %v2249_v5 }
 0xa57   : > { %1838 = vmatpush3.bf16.msra.mxu1 %v1999_v25 }
 0xb25   : > { %v1158_v17 = vpop.f32.mrb[24].mxu1 }
 0xb26   : > { %v1164_v19 = vpack.c.bf16 %v1158_v17, %v1158_v17  ;;  %v1827_v20 = vpop.f32.mrb[25].mxu1  ;;  %v1406_v17 = vsub.s32 7, %v2623_v10  ;;  %v2025_v10 = vld [vmem:[%s2895_s23 + $0x8] sm:$0xff] (!%p1704_p10)  }
 0xb27   : > { %v1161_v21 = vpop.f32.mrb[26].mxu1 }
 0xb28   : > { %v1828_v22 = vpop.f32.mrb[27].mxu1  ;;  %1832 = vmatmul.mubr.msk.bf16.vlgmr.msra.gmra.mrb[20].mxu0 %vm576_vm3, %v1164_v19  ;;  %v1402_v19 = vrot.slane %v2628_v12, %v1401_v16  ;;  %v1407_v21 = vrot.slane %v2628_v12, %v1406_v17 }
 0xb29   : > { %1851 = vmatprep.mubr.msk.bf16.mxu0 %vm2250_vm1, %v2249_v5  ;;  %1844 = vmatpush3.bf16.msra.mxu0 %v2000_v37 }
 0xb2a   : > { %1845 = vmatprep.subr.bf16.mxu0 %v2249_v5 }
 0xbfb   : > { %v1207_v23 = vpop.f32.mrb[20].mxu0 }
 0xbfc   : > { %v1213_v24 = vadd.f32 %v1207_v23, %v1053_v4  ;;  %v1833_v26 = vpop.f32.mrb[21].mxu0 }
 0xbfd   : > { %v1210_v27 = vpop.f32.mrb[22].mxu0  ;;  %v2024_v26 = vld [vmem:[%s2895_s23] sm:$0xff] (!%p1704_p10)  }
 0xbfe   : > { %v1834_v28 = vpop.f32.mrb[23].mxu0  ;;  %v1214_v29 = vadd.f32 %v1213_v24, %v2612_v7  ;;  %v2001_v7 = vld [vmem:[%s2604_s18 + $0x8] sm:$0xff]   ;;  %v2262_v27 = vmov (!%p1704_p10), 0.0  }
 0xbff   : > { %1846 = vmatpush3.bf16.msra.mxu0 %v2001_v7  ;;  %v1705_v28 = vld [vmem:[%s2896_s25] ss:$0 sm:$0xff] (!%p1704_p10) }
 0xc00   : > { %v1215_v30 = vsel %vm521_vm2, %v1214_v29, 0.0  ;;  %1847 = vmatprep.subr.bf16.mxu0 %v2249_v5 }
 0xc01   : > { %1216 = vadd.xlane.f32.xlu0 %v1215_v30 }
 0xc03   : > { %1848 = vmatpush3.bf16.msra.mxu0 %v2002_v50 }
 0xc04   : > { %1849 = vmatprep.subr.bf16.mxu0 %v2249_v5 }
 0xc07   : > { %1850 = vmatpush3.bf16.msra.mxu0 %v2003_v51 }
 0xc08   : > { %1855 = vmatprep.subr.bf16.mxu0 (!%p1704_p10), %v2262_v27 }
 0xc8e   : > { %v1217_v31 = vpop.xlane.xlu0 %1216 }
 0xc8f   : > { %v1219_v32 = vmul.f32 0.03125, %v1217_v31 }
 0xc91   : > { %v1220_v33 = vsub.f32 %v1214_v29, %v1219_v32 }
 0xc93   : > { %v1221_v34 = vmul.f32 %v1220_v33, %v1220_v33 }
 0xc95   : > { %v1222_v35 = vsel %vm521_vm2, %v1221_v34, 0.0 }
 0xc96   : > { %1223 = vadd.xlane.f32.xlu1 %v1222_v35 }
 0xd23   : > { %v1224_v38 = vpop.xlane.xlu1 %1223 }
 0xd24   : > { %v1225_v39 = vmul.f32 0.03125, %v1224_v38 }
 0xd26   : > { %v1226_v40 = vadd.f32 1e-05, %v1225_v39 }
 0xd28   : > { %2020 = vrsqrt.f32 %v1226_v40 }
 0xd32   : > { %v2021_v44 = vpop.eup %2020 }
 0xd33   : > { %v1228_v45 = vmul.f32 %v2021_v44, %v1220_v33 }
 0xd35   : > { %v1233_v47 = vmul.f32 %v1232_v43, %v1228_v45 }
 0xd37   : > { %v1238_v48 = vadd.f32 %v1237_v46, %v1233_v47 }
 0xd39   : > { %v1239_v49 = vpack.c.bf16 %v1238_v48, %v1238_v48 }
 0xd3b   : > { %1840 = vmatmul.mubr.msk.bf16.vlgmr.msra.gmra.mrb[28].mxu1 %vm521_vm2, %v1239_v49 }
 0xe0e   : > { %v1297_v54 = vpop.f32.mrb[28].mxu1 }
 0xe0f   : > { %v1298_v55 = vadd.f32 %v1297_v54, %v1247_v53  ;;  %v1841_v56 = vpop.f32.mrb[29].mxu1 }
 0xe10   : > { %v1300_v57 = vpop.f32.mrb[30].mxu1 }
 0xe11   : > { %v1303_v58 = vmax.f32 %v1298_v55, 0.0  ;;  %v1842_v59 = vpop.f32.mrb[31].mxu1 }
 0xe13   : > { %v1304_v60 = vpack.c.bf16 %v1303_v58, %v1303_v58 }
 0xe15   : > { %1852 = vmatmul.mubr.msk.bf16.vlgmr.msra.gmra.mrb[24].mxu0 %vm1341_vm5, %v1304_v60 }
 0xe16   : > { %1856 = vmatpush3.bf16.msra.mxu0 (!%p1704_p10), %v2024_v26  ;;  %1859 = vmatprep.mubr.msk.bf16.mxu0 (!%p1704_p10), %vm2263_vm6, %v2262_v27 }
 0xe17   : > { %1857 = vmatprep.subr.bf16.mxu0 (!%p1704_p10), %v2262_v27 }
 0xe1a   : > { %1858 = vmatpush3.bf16.msra.mxu0 (!%p1704_p10), %v2025_v10 }
 0xee8   : > { %v1379_v5 = vpop.f32.mrb[24].mxu0 }
 0xee9   : > { %v1380_v63 = vadd.f32 %v1379_v5, %v1316_v62  ;;  %v1853_v0 = vpop.f32.mrb[25].mxu0 }
 0xeea   : > { %v1382_v1 = vpop.f32.mrb[26].mxu0 }
 0xeeb   : > { %v1854_v2 = vpop.f32.mrb[27].mxu0  ;;  %v1385_v3 = vadd.f32 %v1380_v63, %v1238_v48 }
 0xeed   : > { %v1386_v4 = vsel %vm521_vm2, %v1385_v3, 0.0 }
 0xeee   : > { %1387 = vadd.xlane.f32.xlu1 %v1386_v4 }
 0xf7b   : > { %v1388_v6 = vpop.xlane.xlu1 %1387 }
 0xf7c   : > { %v1389_v8 = vmul.f32 0.03125, %v1388_v6 }
 0xf7e   : > { %v1390_v9 = vsub.f32 %v1385_v3, %v1389_v8 }
 0xf80   : > { %v1391_v11 = vmul.f32 %v1390_v9, %v1390_v9 }
 0xf82   : > { %v1392_v13 = vsel %vm521_vm2, %v1391_v11, 0.0 }
 0xf83   : > { %1393 = vadd.xlane.f32.xlu1 %v1392_v13 }
0x1010   : > { %v1394_v14 = vpop.xlane.xlu1 %1393 }
0x1011   : > { %v1395_v18 = vmul.f32 0.03125, %v1394_v14 }
0x1013   : > { %v1396_v15 = vadd.f32 1e-05, %v1395_v18 }
0x1015   : > { %2022 = vrsqrt.f32 %v1396_v15 }
0x101f   : > { %v2023_v20 = vpop.eup %2022 }
0x1020   : > { %v1398_v22 = vmul.f32 %v2023_v20, %v1390_v9  ;;  %1413 = sbr.rel (%p1704_p10) target bundleno = 4351 (0x10ff), region = 76 }
0x1022   : > { %v1403_v23 = vmul.f32 %v1402_v19, %v1398_v22 }
0x1024   : > { %v1408_v24 = vadd.f32 %v1407_v21, %v1403_v23 }
0x1026   : > { %1409 = vst.msk [vmem:[#allocation2] sm:$0xff] %vm521_vm2, %v1408_v24  ;;  %v1414_v12 = vpack.c.bf16 (!%p1704_p10), %v1408_v24, %v1408_v24 }
0x1028   : > { %1860 = vmatmul.mubr.msk.bf16.vlgmr.msra.gmra.mrb[0].mxu0 %vm521_vm2, %v1414_v12 }
0x10fb   : > { %v1475_v29 = vpop.f32.mrb[0].mxu0 }
0x10fc   : > { %v1476_v30 = vadd.f32 %v1705_v28, %v1475_v29  ;;  %v1861_v31 = vpop.f32.mrb[1].mxu0 }
0x10fd   : > { %v1478_v32 = vpop.f32.mrb[2].mxu0 }
0x10fe   : > { %1481 = vst [vmem:[%s466_s27] sm:$0xff] %v1476_v30  ;;  %v1862_v33 = vpop.f32.mrb[3].mxu0 }
0x10ff PF: > { %s2897_s0 = sld [smem:[#allocation15_spill]]  ;;  %s2898_s12 = sld [smem:[#allocation17_spill]] }
0x1100   : > { %s2899_s26 = sld [smem:[#allocation27_spill]]  ;;  %s1496_s28 = sshll.u32 %s466_s27, 4  ;;  %s1497_s28 = int_to_ptr.vmem [resolvable:$true] %s1496_s28 }
0x1101   : > { %s2900_s7 = sand.u32 1, %s2220_s13   ;;  %s2114_s18 = scalar_lea.vmem %s1497_s28, 128 }
0x1102   : > { %s1483_s16 = scalar_lea.sflag [#allocation5], %s2900_s7  ;;  %p2115_p0 = scmp.ne.s32.totalorder %s1497_s28, %s2114_s18 }
0x1103   : > { %s2264_s1 = smov [#allocation9]  }
0x1104   : > { %s2118_s21 = sshll.u32 %s2264_s1, 4  ;;  %s2119_s21 = int_to_ptr.vmem [resolvable:$false] %s2118_s21 }
0x1105   : > { %s1710_s29 = sshll.u32 %s2897_s0, 7  ;;  %p2901_p1 = scmp.ne.s32.totalorder %s2898_s12, 0 }
0x1106   : > { %s2767_s6 = scalar_lea.hbm %s2899_s26, %s1710_s29  ;;  %s2120_s22 = scalar_lea.vmem %s2119_s21, 256 }
0x1107   : > { %p2116_p8 = pnand %p2115_p0, %p2901_p1  ;;  %p2121_p2 = scmp.lt.s32.totalorder %s1497_s28, %s2119_s21 }
0x1108   : > { %p2122_p11 = scmp.lt.s32.totalorder %s2120_s22, %s2114_s18 }
0x1109   : > { %p2117_p7 = pneg %p2116_p8 }
0x110a   : > { %p2123_p9 = por %p2122_p11, %p2121_p2 }
0x110c   : > { %p2124_p4 = pnand %p2123_p9, %p2117_p7 }
0x110e   : > { %2127 = shalt.err (!%p2124_p4)
}
0x110f   : > { %s2128_s20 = scalar_lea.hbm %s2767_s6, 128  ;;  %s2132_s3 = scalar_lea.hbm %s2899_s26, 256 }
0x1110   : > { %p2129_p6 = scmp.ne.s32.totalorder %s2767_s6, %s2128_s20  ;;  %p2133_p3 = scmp.lt.u32.totalorder %s2767_s6, %s2899_s26 }
0x1111   : > { %p2134_p5 = scmp.lt.u32.totalorder %s2132_s3, %s2128_s20  ;;  %p2136_p0 = scmp.lt.u32.totalorder %s2128_s20, %s2767_s6 }
0x1112   : > { %p2130_p12 = pnand %p2129_p6, %p2901_p1 }
0x1113   : > { %p2135_p10 = por %p2134_p5, %p2133_p3 }
0x1114   : > { %p2131_p13 = pneg %p2130_p12 }
0x1115   : > { %p2137_p8 = por %p2136_p0, %p2135_p10 }
0x1117   : > { %p2138_p7 = pnand %p2137_p8, %p2131_p13 }
0x1119   : > { %2141 = shalt.err (!%p2138_p7)
}
0x111a   : > { %1871 = dma.vmem_to_hbm [thread:$0]  (%p2901_p1), %s1497_s28, 128, %s2767_s6, %s1483_s16  }
0x111b PF: > { %s2902_s29 = sld [smem:[#allocation14_spill]]  ;;  %s2903_s8 = sld [smem:[#allocation18_spill]] }
0x111c   : > { %p1891_p2 = scmp.ge.s32.totalorder %s2244_s19, 2 }
0x1121   : > { %s1508_s30 = sand.u32 1, %s2902_s29   ;;  %p2904_p11 = scmp.ne.s32.totalorder %s2903_s8, 0 }
0x1122   : > { %s1509_s7 = scalar_lea.sflag [#allocation5], %s1508_s30 }
0x1123   : > { %p1885_p9 = pnand %p1891_p2, %p2904_p11 }
0x1125   : > { %2199 = dma.done.wait (!%p1885_p9), %s1509_s7, 128  }
0x1126   : > { %2201 = vsyncadd (!%p1885_p9), %s1509_s7, 4294967168  ;;  %s26_s19 = sadd.s32 1, %s2244_s19   ;;  %s2905_s16 = sld [smem:[#allocation16_spill]] }
0x1127   : > { %p23_p4 = scmp.ge.s32.totalorder %s26_s19, 6   ;;  %s2906_s6 = sld [smem:[#allocation19_spill]] }
0x1128   : > { %s2907_s18 = sld [smem:[#allocation20_spill]]  ;;  %s2908_s30 = smov %s2208_s10 }
0x1129   : > { %s2909_s10 = smov %s2212_s11  ;;  %s2910_s11 = smov %s2519_s24 }
0x112a   : > { %s2911_s12 = smov %s2220_s13  ;;  %s2912_s13 = smov %s2224_s14 }
0x112b   : > { %s2913_s14 = smov %s2537_s9  ;;  %s2914_s15 = smov %s2236_s17 }
0x112c   :  { %25 = sbr.rel (!%p23_p4) target bundleno = 18 (0x12), region = 139 }
0x112d   : > { %s2915_s17 = smov %s2906_s6 }
0x1133   :  { %1514 = vsyncpa [#allocation4], 1 }
0x1134   :  { %1516 = vsyncpa [#allocation4 + $0x1], 1 }
0x1135   :  { %1517 = vsyncpa [#allocation7], 1 }
0x1136   :  { %1518 = vsyncpa [#allocation5], 1 }
0x1137   :  { %1520 = vsyncpa [#allocation5 + $0x1], 1 }

</bundles_post_ra>
